<compile_context>
chip_gen: v5e
topology: v5e:2x2
jax: 0.10.0
libtpu: 0.0.40
codegen_flags: <defaults>
</compile_context>

<pallas_src>
import functools

import jax
import jax.numpy as jnp
import numpy as np
from jax import lax
from jax.experimental import pallas as pl
from jax.experimental.pallas import tpu as pltpu

_LANE = 128
_VMEM = pl.BlockSpec(memory_space=pltpu.MemorySpace.VMEM)


def _round_up(n, m):
    return ((n + m - 1) // m) * m


# ----------------------------------------------------------------------------
# Fused kernel: GAP + OutputLayer + unbatched MHA + residual + LayerNorm.
#   x_ref   : (B, C, HW)           free view of NCHW (no host transpose)
#   wh_ref  : (C, 2*pad)           [W_fc^T | pad | W_ex^T | pad]
#   bh_ref  : (1, 2*pad)
#   wqk_ref : (pad, 2*H*pad)       per-head q (pre-scaled) / k blocks, each
#                                  128-lane aligned (lanes >= hd are zero)
#   bqk_ref : (1, 2*H*pad)
#   wvo_ref : (pad, H*pad)         per-head (Wv_h^T @ Wo_h): v-proj fused with
#                                  out-proj, already in output space
#   bvo_ref : (1, pad)             out_proj.bias + sum_h bv_h @ Wo_h
#   g_ref   : (1, pad)  LayerNorm gamma (zero-padded)
#   b_ref   : (1, pad)  LayerNorm beta  (zero-padded)
# Outputs: out_ref (B, pad), ext_ref (B, pad) — lane-dense, sliced in wrapper.
# ----------------------------------------------------------------------------
def fused_poly_kernel(x_ref, wh_ref, bh_ref, wqk_ref, bqk_ref, wvo_ref,
                      bvo_ref, g_ref, b_ref, out_ref, ext_ref,
                      *, num_heads, num_outputs, eps, inv_hw):
    pad = out_ref.shape[-1]
    nh = num_heads

    # Global average pool: (B, C, HW) -> (B, C).  HW is the lane axis, so this
    # is a small cross-lane reduction (the kron pooling matmul is gone).
    feat = jnp.sum(x_ref[...], axis=-1) * inv_hw

    # Fused OutputLayer: regular + extra heads in one lane-padded matmul.
    headcat = (jnp.dot(feat, wh_ref[...], preferred_element_type=jnp.float32)
               + bh_ref[...])                                  # (B, 2*pad)
    reg = headcat[:, :pad]                 # columns >= E are exactly zero
    ext_ref[...] = headcat[:, pad:]

    # q/k in-projection: ONE matmul.  Head h's q lives in lanes
    # [h*pad, h*pad+hd) and its k in [(nh+h)*pad, ...); 1/sqrt(hd) and the
    # in-proj biases for q are pre-folded, padded lanes are exactly zero.
    qk = (jnp.dot(reg, wqk_ref[...], preferred_element_type=jnp.float32)
          + bqk_ref[...])                                      # (B, 2*nh*pad)

    # v projection with the output projection folded in host-side:
    # vo[:, h*pad:(h+1)*pad] == (reg @ Wv_h^T) @ Wo_h  (already output space).
    vo = jnp.dot(reg, wvo_ref[...],
                 preferred_element_type=jnp.float32)           # (B, nh*pad)

    # Per-head attention over the batch/sequence axis.  Heads are a static
    # Python loop over 128-aligned lane slices; all dots are plain 2-D MXU
    # matmuls (no broadcast materialization, no concatenate, no reshapes).
    attn = jnp.zeros_like(reg)
    for h in range(nh):
        q_h = qk[:, h * pad:(h + 1) * pad]
        k_h = qk[:, (nh + h) * pad:(nh + h + 1) * pad]
        s = lax.dot_general(q_h, k_h, (((1,), (1,)), ((), ())),
                            preferred_element_type=jnp.float32)   # (B, B)
        s = s - jnp.max(s, axis=-1, keepdims=True)
        p = jnp.exp(s)
        p = p / jnp.sum(p, axis=-1, keepdims=True)
        attn = attn + jnp.dot(p, vo[:, h * pad:(h + 1) * pad],
                              preferred_element_type=jnp.float32)
    attn = attn + bvo_ref[...]      # folded out_proj.bias + sum_h bv_h @ Wo_h

    # Residual + LayerNorm over the E real features.  All padded lanes of
    # attn / reg / biases are exactly zero, so 128-lane sums equal sums over
    # the E real columns.
    y = attn + reg
    inv_e = 1.0 / float(num_outputs)
    mu = jnp.sum(y, axis=-1, keepdims=True) * inv_e
    var = jnp.sum(y * y, axis=-1, keepdims=True) * inv_e - mu * mu
    out_ref[...] = (y - mu) * lax.rsqrt(var + eps) * g_ref[...] + b_ref[...]


# ----------------------------------------------------------------------------
# One-time host-side (numpy) weight preparation: padding, per-head 128-lane
# packing, 1/sqrt(hd) folding, v-proj/out-proj folding, bias folding.
# ----------------------------------------------------------------------------
def prepare_params(params, num_heads=5):
    f32 = np.float32
    w_fc = np.asarray(params["w_fc"], f32)
    b_fc = np.asarray(params["b_fc"], f32)
    w_ex = np.asarray(params["w_ex"], f32)
    b_ex = np.asarray(params["b_ex"], f32)
    w_in = np.asarray(params["w_in"], f32)
    b_in = np.asarray(params["b_in"], f32)
    w_out = np.asarray(params["w_out"], f32)
    b_out = np.asarray(params["b_out"], f32)
    ln_g = np.asarray(params["ln_g"], f32)
    ln_b = np.asarray(params["ln_b"], f32)

    E, C = w_fc.shape
    extra = w_ex.shape[0]
    hd = E // num_heads
    pad = _round_up(max(E, extra, 1), _LANE)
    scale = 1.0 / np.sqrt(hd)

    # Fused OutputLayer weights: [regular | extra], each lane-padded.
    wh = np.zeros((C, 2 * pad), f32)
    wh[:, :E] = w_fc.T
    wh[:, pad:pad + extra] = w_ex.T
    bh = np.zeros((1, 2 * pad), f32)
    bh[0, :E] = b_fc
    bh[0, pad:pad + extra] = b_ex

    wq, wk, wv = w_in[:E], w_in[E:2 * E], w_in[2 * E:]
    bq, bk, bv = b_in[:E], b_in[E:2 * E], b_in[2 * E:]
    w_out_t = w_out.T                                          # (E, E)

    wqk = np.zeros((pad, 2 * num_heads * pad), f32)
    bqk = np.zeros((1, 2 * num_heads * pad), f32)
    wvo = np.zeros((pad, num_heads * pad), f32)
    bvo = np.zeros((1, pad), f32)
    bvo[0, :E] = b_out
    for h in range(num_heads):
        sl = slice(h * hd, (h + 1) * hd)
        # q block (pre-scaled) and k block, each lane-aligned at h*pad.
        wqk[:E, h * pad:h * pad + hd] = scale * wq[sl].T
        bqk[0, h * pad:h * pad + hd] = scale * bq[sl]
        wqk[:E, (num_heads + h) * pad:(num_heads + h) * pad + hd] = wk[sl].T
        bqk[0, (num_heads + h) * pad:(num_heads + h) * pad + hd] = bk[sl]
        # Fold v-projection with this head's rows of out_proj.weight.T.
        wo_h = w_out_t[sl]                                     # (hd, E)
        wvo[:E, h * pad:h * pad + E] = wv[sl].T @ wo_h
        bvo[0, :E] += bv[sl] @ wo_h

    g = np.zeros((1, pad), f32)
    g[0, :E] = ln_g
    b = np.zeros((1, pad), f32)
    b[0, :E] = ln_b

    prep = {k: jnp.asarray(v) for k, v in dict(
        wh=wh, bh=bh, wqk=wqk, bqk=bqk, wvo=wvo, bvo=bvo, g=g, b=b).items()}
    dims = dict(num_heads=num_heads, num_outputs=int(E), num_extra=int(extra))
    return prep, dims


# ----------------------------------------------------------------------------
# Jitted per-call path: free reshape of NCHW + a single pallas_call.
# ----------------------------------------------------------------------------
@functools.partial(jax.jit,
                   static_argnames=("num_heads", "num_outputs", "num_extra"))
def _poly_forward_core(x, prep, *, num_heads, num_outputs, num_extra):
    B, C, H, W = x.shape
    x3 = x.reshape(B, C, H * W).astype(jnp.float32)   # free view of NCHW
    pad = prep["g"].shape[-1]
    kern = functools.partial(fused_poly_kernel, num_heads=num_heads,
                             num_outputs=num_outputs, eps=1e-5,
                             inv_hw=1.0 / float(H * W))
    out_p, ext_p = pl.pallas_call(
        kern,
        out_shape=(jax.ShapeDtypeStruct((B, pad), jnp.float32),
                   jax.ShapeDtypeStruct((B, pad), jnp.float32)),
        in_specs=[_VMEM] * 9,
        out_specs=(_VMEM, _VMEM),
    )(x3, prep["wh"], prep["bh"], prep["wqk"], prep["bqk"],
      prep["wvo"], prep["bvo"], prep["g"], prep["b"])
    return out_p[:, :num_outputs], ext_p[:, :num_extra]


def poly_regression_forward(x, prep, dims, epoch=None,
                            curriculum_steps=(0, 0, 0, 0)):
    """x: (B, C, H, W) NCHW; prep/dims from prepare_params."""
    out, extra_out = _poly_forward_core(
        x, prep, num_heads=dims["num_heads"],
        num_outputs=dims["num_outputs"], num_extra=dims["num_extra"])
    # Curriculum masking (only active when epoch is given; static Python cond).
    if epoch is not None:
        for i in range(len(curriculum_steps)):
            if epoch < curriculum_steps[i]:
                out = out.at[:, -len(curriculum_steps) + i].set(0.0)
    return out, extra_out


# ----------------------------------------------------------------------------
# Pure-JAX reference (mirrors PyTorch semantics) for a correctness check.
# ----------------------------------------------------------------------------
def reference_forward(x, params, num_heads=5):
    B, C = x.shape[0], x.shape[1]
    feat = jnp.mean(x.reshape(B, C, -1), axis=-1)
    reg = feat @ params["w_fc"].T + params["b_fc"]
    extra = feat @ params["w_ex"].T + params["b_ex"]

    E = reg.shape[1]
    hd = E // num_heads
    qkv = reg @ params["w_in"].T + params["b_in"]
    q, k, v = qkv[:, :E], qkv[:, E:2 * E], qkv[:, 2 * E:]
    outs = []
    for h in range(num_heads):
        qh = q[:, h * hd:(h + 1) * hd] / jnp.sqrt(hd).astype(jnp.float32)
        kh = k[:, h * hd:(h + 1) * hd]
        vh = v[:, h * hd:(h + 1) * hd]
        p = jax.nn.softmax(qh @ kh.T, axis=-1)
        outs.append(p @ vh)
    attn = jnp.concatenate(outs, axis=-1) @ params["w_out"].T + params["b_out"]
    y = attn + reg
    mu = y.mean(-1, keepdims=True)
    var = ((y - mu) ** 2).mean(-1, keepdims=True)
    out = (y - mu) / jnp.sqrt(var + 1e-5) * params["ln_g"] + params["ln_b"]
    return out, extra


if __name__ == "__main__":
    # Small shapes consistent with the module:
    #   batch=4, backbone feature channels (fc.in_features)=32, spatial 16x16,
    #   num_outputs=35 (divisible by attention_heads=5), extra_outputs=10.
    B, C, H, W = 4, 32, 16, 16
    num_outputs, heads, extra = 35, 5, 10

    key = jax.random.PRNGKey(0)
    ks = jax.random.split(key, 10)
    x = jax.random.normal(ks[0], (B, C, H, W), jnp.float32)

    params = {
        "w_fc": 0.1 * jax.random.normal(ks[1], (num_outputs, C), jnp.float32),
        "b_fc": 0.1 * jax.random.normal(ks[2], (num_outputs,), jnp.float32),
        "w_ex": 0.1 * jax.random.normal(ks[3], (extra, C), jnp.float32),
        "b_ex": 0.1 * jax.random.normal(ks[4], (extra,), jnp.float32),
        "w_in": 0.1 * jax.random.normal(ks[5], (3 * num_outputs, num_outputs),
                                        jnp.float32),
        "b_in": 0.1 * jax.random.normal(ks[6], (3 * num_outputs,), jnp.float32),
        "w_out": 0.1 * jax.random.normal(ks[7], (num_outputs, num_outputs),
                                         jnp.float32),
        "b_out": 0.1 * jax.random.normal(ks[8], (num_outputs,), jnp.float32),
        "ln_g": jnp.ones((num_outputs,), jnp.float32),   # LayerNorm default init
        "ln_b": jnp.zeros((num_outputs,), jnp.float32),
    }

    # One-time host-side weight prep (cached across calls).
    prep, dims = prepare_params(params, num_heads=heads)

    out, extra_out = poly_regression_forward(x, prep, dims, epoch=None)
    jax.block_until_ready((out, extra_out))

    ref_out, ref_extra = reference_forward(x, params, num_heads=heads)
    assert out.shape == (B, num_outputs) and extra_out.shape == (B, extra)
    # Tolerance covers f32 reassociation from the host-side weight folding.
    assert np.allclose(np.asarray(out), np.asarray(ref_out),
                       rtol=1e-3, atol=1e-3)
    assert np.allclose(np.asarray(extra_out), np.asarray(ref_extra),
                       rtol=1e-3, atol=1e-3)
    print("KERNEL_OK")
</pallas_src>

<mosaic_0001>
module attributes {stable_mosaic.version = 11 : i64} {
  func.func @fused_poly_kernel(%arg0: memref<4x32x256xf32, #tpu.memory_space<vmem>>, %arg1: memref<32x256xf32, #tpu.memory_space<vmem>>, %arg2: memref<1x256xf32, #tpu.memory_space<vmem>>, %arg3: memref<128x1280xf32, #tpu.memory_space<vmem>>, %arg4: memref<1x1280xf32, #tpu.memory_space<vmem>>, %arg5: memref<128x640xf32, #tpu.memory_space<vmem>>, %arg6: memref<1x128xf32, #tpu.memory_space<vmem>>, %arg7: memref<1x128xf32, #tpu.memory_space<vmem>>, %arg8: memref<1x128xf32, #tpu.memory_space<vmem>>, %arg9: memref<4x128xf32, #tpu.memory_space<vmem>>, %arg10: memref<4x128xf32, #tpu.memory_space<vmem>>) attributes {dimension_semantics = [], scalar_prefetch = 0 : i64, scratch_operands = 0 : i64, tpu.core_type = #tpu.core_type<tc>} {
    %c0 = arith.constant 0 : index
    %c0_0 = arith.constant 0 : index
    %c0_1 = arith.constant 0 : index
    %0 = vector.load %arg0[%c0, %c0_0, %c0_1] : memref<4x32x256xf32, #tpu.memory_space<vmem>>, vector<4x32x256xf32>
    %cst = arith.constant dense<0.000000e+00> : vector<4x32xf32>
    %1 = vector.multi_reduction <add>, %0, %cst [2] : vector<4x32x256xf32> to vector<4x32xf32>
    %cst_2 = arith.constant 3.906250e-03 : f32
    %2 = vector.broadcast %cst_2 : f32 to vector<4x32xf32>
    %3 = arith.mulf %1, %2 : vector<4x32xf32>
    %c0_3 = arith.constant 0 : index
    %c0_4 = arith.constant 0 : index
    %4 = vector.load %arg1[%c0_3, %c0_4] : memref<32x256xf32, #tpu.memory_space<vmem>>, vector<32x256xf32>
    %cst_5 = arith.constant dense<0.000000e+00> : vector<4x256xf32>
    %5 = tpu.matmul %3, %4, %cst_5 {dimension_numbers = #tpu.dot_dimension_numbers<[1], [0], [0], [1], [0, 0, 1, 1], [], []>} : vector<4x32xf32>, vector<32x256xf32>, vector<4x256xf32> -> vector<4x256xf32>
    %c0_6 = arith.constant 0 : index
    %c0_7 = arith.constant 0 : index
    %6 = vector.load %arg2[%c0_6, %c0_7] : memref<1x256xf32, #tpu.memory_space<vmem>>, vector<1x256xf32>
    %7 = vector.broadcast %6 : vector<1x256xf32> to vector<4x256xf32>
    %8 = arith.addf %5, %7 : vector<4x256xf32>
    %9 = vector.extract_strided_slice %8 {offsets = [0, 0], sizes = [4, 128], strides = [1, 1]} : vector<4x256xf32> to vector<4x128xf32>
    %10 = vector.extract_strided_slice %8 {offsets = [0, 128], sizes = [4, 128], strides = [1, 1]} : vector<4x256xf32> to vector<4x128xf32>
    %c0_8 = arith.constant 0 : index
    %c0_9 = arith.constant 0 : index
    %11 = vector.load %arg10[%c0_8, %c0_9] : memref<4x128xf32, #tpu.memory_space<vmem>>, vector<4x128xf32>
    tpu.vector_store %arg10[%c0_8, %c0_9], %10 {strides = array<i32>} : memref<4x128xf32, #tpu.memory_space<vmem>>, vector<4x128xf32>,
    %c0_10 = arith.constant 0 : index
    %c0_11 = arith.constant 0 : index
    %12 = vector.load %arg3[%c0_10, %c0_11] : memref<128x1280xf32, #tpu.memory_space<vmem>>, vector<128x1280xf32>
    %cst_12 = arith.constant dense<0.000000e+00> : vector<4x1280xf32>
    %13 = tpu.matmul %9, %12, %cst_12 {dimension_numbers = #tpu.dot_dimension_numbers<[1], [0], [0], [1], [0, 0, 1, 1], [], []>} : vector<4x128xf32>, vector<128x1280xf32>, vector<4x1280xf32> -> vector<4x1280xf32>
    %c0_13 = arith.constant 0 : index
    %c0_14 = arith.constant 0 : index
    %14 = vector.load %arg4[%c0_13, %c0_14] : memref<1x1280xf32, #tpu.memory_space<vmem>>, vector<1x1280xf32>
    %15 = vector.broadcast %14 : vector<1x1280xf32> to vector<4x1280xf32>
    %16 = arith.addf %13, %15 : vector<4x1280xf32>
    %c0_15 = arith.constant 0 : index
    %c0_16 = arith.constant 0 : index
    %17 = vector.load %arg5[%c0_15, %c0_16] : memref<128x640xf32, #tpu.memory_space<vmem>>, vector<128x640xf32>
    %cst_17 = arith.constant dense<0.000000e+00> : vector<4x640xf32>
    %18 = tpu.matmul %9, %17, %cst_17 {dimension_numbers = #tpu.dot_dimension_numbers<[1], [0], [0], [1], [0, 0, 1, 1], [], []>} : vector<4x128xf32>, vector<128x640xf32>, vector<4x640xf32> -> vector<4x640xf32>
    %cst_18 = arith.constant 0.000000e+00 : f32
    %19 = vector.broadcast %cst_18 : f32 to vector<4x128xf32>
    %20 = vector.extract_strided_slice %16 {offsets = [0, 0], sizes = [4, 128], strides = [1, 1]} : vector<4x1280xf32> to vector<4x128xf32>
    %21 = vector.extract_strided_slice %16 {offsets = [0, 640], sizes = [4, 128], strides = [1, 1]} : vector<4x1280xf32> to vector<4x128xf32>
    %cst_19 = arith.constant dense<0.000000e+00> : vector<4x4xf32>
    %22 = tpu.matmul %20, %21, %cst_19 {dimension_numbers = #tpu.dot_dimension_numbers<[1], [1], [0], [0], [0, 0, 1, 0], [], []>} : vector<4x128xf32>, vector<4x128xf32>, vector<4x4xf32> -> vector<4x4xf32>
    %cst_20 = arith.constant dense<0xFF800000> : vector<4xf32>
    %23 = vector.multi_reduction <maximumf>, %22, %cst_20 [1] : vector<4x4xf32> to vector<4xf32>
    %24 = vector.shape_cast %23 : vector<4xf32> to vector<4x1xf32>
    %25 = vector.broadcast %24 : vector<4x1xf32> to vector<4x4xf32>
    %26 = arith.subf %22, %25 : vector<4x4xf32>
    %27 = math.exp %26 : vector<4x4xf32>
    %cst_21 = arith.constant dense<0.000000e+00> : vector<4xf32>
    %28 = vector.multi_reduction <add>, %27, %cst_21 [1] : vector<4x4xf32> to vector<4xf32>
    %29 = vector.shape_cast %28 : vector<4xf32> to vector<4x1xf32>
    %30 = vector.broadcast %29 : vector<4x1xf32> to vector<4x4xf32>
    %31 = arith.divf %27, %30 : vector<4x4xf32>
    %32 = vector.extract_strided_slice %18 {offsets = [0, 0], sizes = [4, 128], strides = [1, 1]} : vector<4x640xf32> to vector<4x128xf32>
    %cst_22 = arith.constant dense<0.000000e+00> : vector<4x128xf32>
    %33 = tpu.matmul %31, %32, %cst_22 {dimension_numbers = #tpu.dot_dimension_numbers<[1], [0], [0], [1], [0, 0, 1, 1], [], []>} : vector<4x4xf32>, vector<4x128xf32>, vector<4x128xf32> -> vector<4x128xf32>
    %34 = arith.addf %19, %33 : vector<4x128xf32>
    %35 = vector.extract_strided_slice %16 {offsets = [0, 128], sizes = [4, 128], strides = [1, 1]} : vector<4x1280xf32> to vector<4x128xf32>
    %36 = vector.extract_strided_slice %16 {offsets = [0, 768], sizes = [4, 128], strides = [1, 1]} : vector<4x1280xf32> to vector<4x128xf32>
    %cst_23 = arith.constant dense<0.000000e+00> : vector<4x4xf32>
    %37 = tpu.matmul %35, %36, %cst_23 {dimension_numbers = #tpu.dot_dimension_numbers<[1], [1], [0], [0], [0, 0, 1, 0], [], []>} : vector<4x128xf32>, vector<4x128xf32>, vector<4x4xf32> -> vector<4x4xf32>
    %cst_24 = arith.constant dense<0xFF800000> : vector<4xf32>
    %38 = vector.multi_reduction <maximumf>, %37, %cst_24 [1] : vector<4x4xf32> to vector<4xf32>
    %39 = vector.shape_cast %38 : vector<4xf32> to vector<4x1xf32>
    %40 = vector.broadcast %39 : vector<4x1xf32> to vector<4x4xf32>
    %41 = arith.subf %37, %40 : vector<4x4xf32>
    %42 = math.exp %41 : vector<4x4xf32>
    %cst_25 = arith.constant dense<0.000000e+00> : vector<4xf32>
    %43 = vector.multi_reduction <add>, %42, %cst_25 [1] : vector<4x4xf32> to vector<4xf32>
    %44 = vector.shape_cast %43 : vector<4xf32> to vector<4x1xf32>
    %45 = vector.broadcast %44 : vector<4x1xf32> to vector<4x4xf32>
    %46 = arith.divf %42, %45 : vector<4x4xf32>
    %47 = vector.extract_strided_slice %18 {offsets = [0, 128], sizes = [4, 128], strides = [1, 1]} : vector<4x640xf32> to vector<4x128xf32>
    %cst_26 = arith.constant dense<0.000000e+00> : vector<4x128xf32>
    %48 = tpu.matmul %46, %47, %cst_26 {dimension_numbers = #tpu.dot_dimension_numbers<[1], [0], [0], [1], [0, 0, 1, 1], [], []>} : vector<4x4xf32>, vector<4x128xf32>, vector<4x128xf32> -> vector<4x128xf32>
    %49 = arith.addf %34, %48 : vector<4x128xf32>
    %50 = vector.extract_strided_slice %16 {offsets = [0, 256], sizes = [4, 128], strides = [1, 1]} : vector<4x1280xf32> to vector<4x128xf32>
    %51 = vector.extract_strided_slice %16 {offsets = [0, 896], sizes = [4, 128], strides = [1, 1]} : vector<4x1280xf32> to vector<4x128xf32>
    %cst_27 = arith.constant dense<0.000000e+00> : vector<4x4xf32>
    %52 = tpu.matmul %50, %51, %cst_27 {dimension_numbers = #tpu.dot_dimension_numbers<[1], [1], [0], [0], [0, 0, 1, 0], [], []>} : vector<4x128xf32>, vector<4x128xf32>, vector<4x4xf32> -> vector<4x4xf32>
    %cst_28 = arith.constant dense<0xFF800000> : vector<4xf32>
    %53 = vector.multi_reduction <maximumf>, %52, %cst_28 [1] : vector<4x4xf32> to vector<4xf32>
    %54 = vector.shape_cast %53 : vector<4xf32> to vector<4x1xf32>
    %55 = vector.broadcast %54 : vector<4x1xf32> to vector<4x4xf32>
    %56 = arith.subf %52, %55 : vector<4x4xf32>
    %57 = math.exp %56 : vector<4x4xf32>
    %cst_29 = arith.constant dense<0.000000e+00> : vector<4xf32>
    %58 = vector.multi_reduction <add>, %57, %cst_29 [1] : vector<4x4xf32> to vector<4xf32>
    %59 = vector.shape_cast %58 : vector<4xf32> to vector<4x1xf32>
    %60 = vector.broadcast %59 : vector<4x1xf32> to vector<4x4xf32>
    %61 = arith.divf %57, %60 : vector<4x4xf32>
    %62 = vector.extract_strided_slice %18 {offsets = [0, 256], sizes = [4, 128], strides = [1, 1]} : vector<4x640xf32> to vector<4x128xf32>
    %cst_30 = arith.constant dense<0.000000e+00> : vector<4x128xf32>
    %63 = tpu.matmul %61, %62, %cst_30 {dimension_numbers = #tpu.dot_dimension_numbers<[1], [0], [0], [1], [0, 0, 1, 1], [], []>} : vector<4x4xf32>, vector<4x128xf32>, vector<4x128xf32> -> vector<4x128xf32>
    %64 = arith.addf %49, %63 : vector<4x128xf32>
    %65 = vector.extract_strided_slice %16 {offsets = [0, 384], sizes = [4, 128], strides = [1, 1]} : vector<4x1280xf32> to vector<4x128xf32>
    %66 = vector.extract_strided_slice %16 {offsets = [0, 1024], sizes = [4, 128], strides = [1, 1]} : vector<4x1280xf32> to vector<4x128xf32>
    %cst_31 = arith.constant dense<0.000000e+00> : vector<4x4xf32>
    %67 = tpu.matmul %65, %66, %cst_31 {dimension_numbers = #tpu.dot_dimension_numbers<[1], [1], [0], [0], [0, 0, 1, 0], [], []>} : vector<4x128xf32>, vector<4x128xf32>, vector<4x4xf32> -> vector<4x4xf32>
    %cst_32 = arith.constant dense<0xFF800000> : vector<4xf32>
    %68 = vector.multi_reduction <maximumf>, %67, %cst_32 [1] : vector<4x4xf32> to vector<4xf32>
    %69 = vector.shape_cast %68 : vector<4xf32> to vector<4x1xf32>
    %70 = vector.broadcast %69 : vector<4x1xf32> to vector<4x4xf32>
    %71 = arith.subf %67, %70 : vector<4x4xf32>
    %72 = math.exp %71 : vector<4x4xf32>
    %cst_33 = arith.constant dense<0.000000e+00> : vector<4xf32>
    %73 = vector.multi_reduction <add>, %72, %cst_33 [1] : vector<4x4xf32> to vector<4xf32>
    %74 = vector.shape_cast %73 : vector<4xf32> to vector<4x1xf32>
    %75 = vector.broadcast %74 : vector<4x1xf32> to vector<4x4xf32>
    %76 = arith.divf %72, %75 : vector<4x4xf32>
    %77 = vector.extract_strided_slice %18 {offsets = [0, 384], sizes = [4, 128], strides = [1, 1]} : vector<4x640xf32> to vector<4x128xf32>
    %cst_34 = arith.constant dense<0.000000e+00> : vector<4x128xf32>
    %78 = tpu.matmul %76, %77, %cst_34 {dimension_numbers = #tpu.dot_dimension_numbers<[1], [0], [0], [1], [0, 0, 1, 1], [], []>} : vector<4x4xf32>, vector<4x128xf32>, vector<4x128xf32> -> vector<4x128xf32>
    %79 = arith.addf %64, %78 : vector<4x128xf32>
    %80 = vector.extract_strided_slice %16 {offsets = [0, 512], sizes = [4, 128], strides = [1, 1]} : vector<4x1280xf32> to vector<4x128xf32>
    %81 = vector.extract_strided_slice %16 {offsets = [0, 1152], sizes = [4, 128], strides = [1, 1]} : vector<4x1280xf32> to vector<4x128xf32>
    %cst_35 = arith.constant dense<0.000000e+00> : vector<4x4xf32>
    %82 = tpu.matmul %80, %81, %cst_35 {dimension_numbers = #tpu.dot_dimension_numbers<[1], [1], [0], [0], [0, 0, 1, 0], [], []>} : vector<4x128xf32>, vector<4x128xf32>, vector<4x4xf32> -> vector<4x4xf32>
    %cst_36 = arith.constant dense<0xFF800000> : vector<4xf32>
    %83 = vector.multi_reduction <maximumf>, %82, %cst_36 [1] : vector<4x4xf32> to vector<4xf32>
    %84 = vector.shape_cast %83 : vector<4xf32> to vector<4x1xf32>
    %85 = vector.broadcast %84 : vector<4x1xf32> to vector<4x4xf32>
    %86 = arith.subf %82, %85 : vector<4x4xf32>
    %87 = math.exp %86 : vector<4x4xf32>
    %cst_37 = arith.constant dense<0.000000e+00> : vector<4xf32>
    %88 = vector.multi_reduction <add>, %87, %cst_37 [1] : vector<4x4xf32> to vector<4xf32>
    %89 = vector.shape_cast %88 : vector<4xf32> to vector<4x1xf32>
    %90 = vector.broadcast %89 : vector<4x1xf32> to vector<4x4xf32>
    %91 = arith.divf %87, %90 : vector<4x4xf32>
    %92 = vector.extract_strided_slice %18 {offsets = [0, 512], sizes = [4, 128], strides = [1, 1]} : vector<4x640xf32> to vector<4x128xf32>
    %cst_38 = arith.constant dense<0.000000e+00> : vector<4x128xf32>
    %93 = tpu.matmul %91, %92, %cst_38 {dimension_numbers = #tpu.dot_dimension_numbers<[1], [0], [0], [1], [0, 0, 1, 1], [], []>} : vector<4x4xf32>, vector<4x128xf32>, vector<4x128xf32> -> vector<4x128xf32>
    %94 = arith.addf %79, %93 : vector<4x128xf32>
    %c0_39 = arith.constant 0 : index
    %c0_40 = arith.constant 0 : index
    %95 = vector.load %arg6[%c0_39, %c0_40] : memref<1x128xf32, #tpu.memory_space<vmem>>, vector<1x128xf32>
    %96 = vector.broadcast %95 : vector<1x128xf32> to vector<4x128xf32>
    %97 = arith.addf %94, %96 : vector<4x128xf32>
    %98 = arith.addf %97, %9 : vector<4x128xf32>
    %cst_41 = arith.constant dense<0.000000e+00> : vector<4xf32>
    %99 = vector.multi_reduction <add>, %98, %cst_41 [1] : vector<4x128xf32> to vector<4xf32>
    %100 = vector.shape_cast %99 : vector<4xf32> to vector<4x1xf32>
    %cst_42 = arith.constant 0.0285714287 : f32
    %101 = vector.broadcast %cst_42 : f32 to vector<4x1xf32>
    %102 = arith.mulf %100, %101 : vector<4x1xf32>
    %103 = arith.mulf %98, %98 : vector<4x128xf32>
    %cst_43 = arith.constant dense<0.000000e+00> : vector<4xf32>
    %104 = vector.multi_reduction <add>, %103, %cst_43 [1] : vector<4x128xf32> to vector<4xf32>
    %105 = vector.shape_cast %104 : vector<4xf32> to vector<4x1xf32>
    %cst_44 = arith.constant 0.0285714287 : f32
    %106 = vector.broadcast %cst_44 : f32 to vector<4x1xf32>
    %107 = arith.mulf %105, %106 : vector<4x1xf32>
    %108 = arith.mulf %102, %102 : vector<4x1xf32>
    %109 = arith.subf %107, %108 : vector<4x1xf32>
    %110 = vector.broadcast %102 : vector<4x1xf32> to vector<4x128xf32>
    %111 = arith.subf %98, %110 : vector<4x128xf32>
    %cst_45 = arith.constant 9.99999974E-6 : f32
    %112 = vector.broadcast %cst_45 : f32 to vector<4x1xf32>
    %113 = arith.addf %109, %112 : vector<4x1xf32>
    %114 = math.rsqrt %113 : vector<4x1xf32>
    %115 = vector.broadcast %114 : vector<4x1xf32> to vector<4x128xf32>
    %116 = arith.mulf %111, %115 : vector<4x128xf32>
    %c0_46 = arith.constant 0 : index
    %c0_47 = arith.constant 0 : index
    %117 = vector.load %arg7[%c0_46, %c0_47] : memref<1x128xf32, #tpu.memory_space<vmem>>, vector<1x128xf32>
    %118 = vector.broadcast %117 : vector<1x128xf32> to vector<4x128xf32>
    %119 = arith.mulf %116, %118 : vector<4x128xf32>
    %c0_48 = arith.constant 0 : index
    %c0_49 = arith.constant 0 : index
    %120 = vector.load %arg8[%c0_48, %c0_49] : memref<1x128xf32, #tpu.memory_space<vmem>>, vector<1x128xf32>
    %121 = vector.broadcast %120 : vector<1x128xf32> to vector<4x128xf32>
    %122 = arith.addf %119, %121 : vector<4x128xf32>
    %c0_50 = arith.constant 0 : index
    %c0_51 = arith.constant 0 : index
    %123 = vector.load %arg9[%c0_50, %c0_51] : memref<4x128xf32, #tpu.memory_space<vmem>>, vector<4x128xf32>
    tpu.vector_store %arg9[%c0_50, %c0_51], %122 {strides = array<i32>} : memref<4x128xf32, #tpu.memory_space<vmem>>, vector<4x128xf32>,
    return
  }
}

</mosaic_0001>

<bundles_post_ra>
// kernel: _poly_forward_core.1
= control target key start
LH: loop header
LB: loop body
LE: loop exit
PB: predicated region body
PF: predicated region fallthrough
CT: control target
= control target key end

     0   :  { %16 = vsyncpa [#allocation3], 0  ;;  %s2284_s0 = inlined_call_operand.vmem [shape: f32[4,32,256], index: 0, kind: input, shape index: {}]   ;;  %s2285_s1 = inlined_call_operand.hbm [shape: f32[32,256], index: 1, kind: input, shape index: {}]   ;;  %s2286_s2 = inlined_call_operand.vmem [shape: f32[1,256], index: 2, kind: input, shape index: {}]   ;;  %s2287_s3 = inlined_call_operand.vmem [shape: f32[128,1280], index: 3, kind: input, shape index: {}]   ;;  %s2288_s4 = inlined_call_operand.hbm [shape: f32[1,1280], index: 4, kind: input, shape index: {}]   ;;  %s2289_s5 = inlined_call_operand.hbm [shape: f32[128,640], index: 5, kind: input, shape index: {}]   ;;  %s2290_s6 = inlined_call_operand.vmem [shape: f32[1,128], index: 6, kind: input, shape index: {}]   ;;  %s2291_s7 = inlined_call_operand.vmem [shape: f32[1,128], index: 7, kind: input, shape index: {}]   ;;  %s2292_s8 = inlined_call_operand.vmem [shape: f32[1,128], index: 8, kind: input, shape index: {}]   ;;  %s2293_s9 = inlined_call_operand.hbm [shape: f32[4,128], index: 9, kind: output, shape index: {0}]   ;;  %s2294_s10 = inlined_call_operand.hbm [shape: f32[4,128], index: 10, kind: output, shape index: {1}]  }
   0x1   :  { %17 = vsyncpa [#allocation6], 0 }
   0x2   :  { %18 = vsyncpa [#allocation4], 0  ;;  %s44_s15 = sshll.u32 %s2288_s4, 4  ;;  %s45_s15 = int_to_ptr.hbm [resolvable:$true] %s44_s15 }
   0x3   :  { %19 = vsyncpa [#allocation10], 0  ;;  %s1462_s16 = smov [#allocation5]   ;;  %s26_s20 = sshll.u32 %s2285_s1, 4  ;;  %s27_s20 = int_to_ptr.hbm [resolvable:$true] %s26_s20 }
   0x4   :  { %s46_s17 = sshll.u32 %s1462_s16, 4  ;;  %s1463_s21 = smov [#allocation2]   ;;  %s47_s17 = int_to_ptr.vmem [resolvable:$true] %s46_s17 }
   0x5   :  { %49 = dma.hbm_to_vmem [thread:$0]  %s45_s15, 160, %s47_s17, [#allocation6]  }
   0x6   :  { %s28_s22 = sshll.u32 %s1463_s21, 4  ;;  %s1464_s23 = smov 256   ;;  %s29_s22 = int_to_ptr.vmem [resolvable:$true] %s28_s22 }
   0x7   :  { %s1465_s24 = smov 16   ;;  %s54_s4 = sshll.u32 %s2289_s5, 4  ;;  %s55_s4 = int_to_ptr.hbm [resolvable:$true] %s54_s4 }
   0x8   :  { %34 = dma.hbm_to_vmem [thread:$0]  %s27_s20, 1024, %s29_s22, [#allocation3], %s1464_s23, %s1464_s23, %s1465_s24  }
   0x9   :  { %s1466_s27 = smov [#allocation7]   ;;  %s1467_s29 = smov 640  }
   0xa   :  { %s56_s28 = sshll.u32 %s1466_s27, 4  ;;  %s1468_s30 = smov 40   ;;  %s57_s28 = int_to_ptr.vmem [resolvable:$true] %s56_s28 }
   0xb   :  { %62 = dma.hbm_to_vmem [thread:$0]  %s55_s4, 10240, %s57_s28, [#allocation6], %s1467_s29, %s1467_s29, %s1468_s30  }
   0xc   :  { %1454 = dma.done.wait [#allocation3], 1024  }
   0xd   :  { %1455 = vsyncadd [#allocation3], 4294966272 }
   0xe   :  { %1456 = dma.done.wait [#allocation6], 10400  }
   0xf   :  { %1457 = vsyncadd [#allocation6], 4294956896  ;;  %v89_v0 = vld [vmem:[%s2284_s0 + $0x40] sm:$0xff]  ;;  %v90_v1 = vld [vmem:[%s2284_s0 + $0x48] sm:$0xff]  ;;  %vm212_vm0 = vcmask 130112   ;;  %vm216_vm1 = vcmask 195712  }
  0x10   :  { %v85_v2 = vld [vmem:[%s2284_s0 + $0x20] sm:$0xff]  ;;  %v125_v3 = vadd.f32 %v90_v1, %v89_v0  ;;  %v86_v4 = vld [vmem:[%s2284_s0 + $0x28] sm:$0xff]  ;;  %v91_v9 = vld [vmem:[%s2284_s0 + $0x50] sm:$0xff]  ;;  %vm220_vm2 = vcmask 261312   ;;  %vm243_vm3 = vcmask 1041409   ;;  %vm245_vm4 = vcmask 1042434  }
  0x11   :  { %v81_v5 = vld [vmem:[%s2284_s0] sm:$0xff]  ;;  %v82_v6 = vld [vmem:[%s2284_s0 + $0x8] sm:$0xff]  ;;  %v119_v7 = vadd.f32 %v86_v4, %v85_v2  ;;  %v92_v10 = vld [vmem:[%s2284_s0 + $0x58] sm:$0xff]  ;;  %vm247_vm5 = vcmask 1043459   ;;  %vm249_vm6 = vcmask 261120   ;;  %vm950_vm7 = vcmask 1043456  }
  0x12   :  { %v113_v8 = vadd.f32 %v82_v6, %v81_v5  ;;  %126 = vadd.xlane.f32.xlu1 %v125_v3  ;;  %v93_v11 = vld [vmem:[%s2284_s0 + $0x60] sm:$0xff]  ;;  %v94_v12 = vld [vmem:[%s2284_s0 + $0x68] sm:$0xff]  ;;  %v83_v13 = vld [vmem:[%s2284_s0 + $0x10] sm:$0xff]  ;;  %v128_v15 = vadd.f32 %v92_v10, %v91_v9  ;;  %vm877_vm8 = vcmask 27648   ;;  %vm946_vm13 = vcmask 31744   ;;  %s1469_s12 = smov [#allocation9]  }
  0x13   :  { %120 = vadd.xlane.f32.xlu2 %v119_v7  ;;  %v84_v14 = vld [vmem:[%s2284_s0 + $0x18] sm:$0xff]  ;;  %v131_v16 = vadd.f32 %v94_v12, %v93_v11  ;;  %v99_v18 = vld [vmem:[%s2284_s0 + $0x90] sm:$0xff]  ;;  %v97_v22 = vld [vmem:[%s2284_s0 + $0x80] sm:$0xff]  ;;  %s1270_s13 = sshll.u32 %s1469_s12, 4  ;;  %s1272_s15 = sshll.u32 %s2294_s10, 4  ;;  %s1271_s13 = int_to_ptr.vmem [resolvable:$true] %s1270_s13  ;;  %s1273_s15 = int_to_ptr.hbm [resolvable:$true] %s1272_s15 }
  0x14   :  { %114 = vadd.xlane.f32.xlu0 %v113_v8  ;;  %v116_v17 = vadd.f32 %v84_v14, %v83_v13  ;;  %v100_v19 = vld [vmem:[%s2284_s0 + $0x98] sm:$0xff]  ;;  %v87_v20 = vld [vmem:[%s2284_s0 + $0x30] sm:$0xff]  ;;  %v98_v23 = vld [vmem:[%s2284_s0 + $0x88] sm:$0xff]  ;;  %s1470_s18 = smov [#allocation8]   ;;  %s1261_s22 = sshll.u32 %s2293_s9, 4  ;;  %s1262_s22 = int_to_ptr.hbm [resolvable:$true] %s1261_s22 }
  0x15   :  { %v88_v21 = vld [vmem:[%s2284_s0 + $0x38] sm:$0xff]  ;;  %v140_v24 = vadd.f32 %v100_v19, %v99_v18  ;;  %v137_v26 = vadd.f32 %v98_v23, %v97_v22  ;;  %v101_v27 = vld [vmem:[%s2284_s0 + $0xa0] sm:$0xff]  ;;  %v102_v28 = vld [vmem:[%s2284_s0 + $0xa8] sm:$0xff]  ;;  %s1259_s19 = sshll.u32 %s1470_s18, 4  ;;  %s1260_s19 = int_to_ptr.vmem [resolvable:$true] %s1259_s19 }
  0x16   :  { %v122_v25 = vadd.f32 %v88_v21, %v87_v20  ;;  %v95_v29 = vld [vmem:[%s2284_s0 + $0x70] sm:$0xff]  ;;  %v96_v30 = vld [vmem:[%s2284_s0 + $0x78] sm:$0xff]  ;;  %v105_v31 = vld [vmem:[%s2284_s0 + $0xc0] sm:$0xff]  ;;  %v143_v33 = vadd.f32 %v102_v28, %v101_v27 }
  0x17   :  { %v106_v32 = vld [vmem:[%s2284_s0 + $0xc8] sm:$0xff]  ;;  %v134_v34 = vadd.f32 %v96_v30, %v95_v29  ;;  %v103_v36 = vld [vmem:[%s2284_s0 + $0xb0] sm:$0xff]  ;;  %v104_v37 = vld [vmem:[%s2284_s0 + $0xb8] sm:$0xff] }
  0x18   :  { %v149_v35 = vadd.f32 %v106_v32, %v105_v31  ;;  %v107_v38 = vld [vmem:[%s2284_s0 + $0xd0] sm:$0xff]  ;;  %v108_v39 = vld [vmem:[%s2284_s0 + $0xd8] sm:$0xff]  ;;  %v109_v40 = vld [vmem:[%s2284_s0 + $0xe0] sm:$0xff]  ;;  %v146_v42 = vadd.f32 %v104_v37, %v103_v36 }
  0x19   :  { %v110_v41 = vld [vmem:[%s2284_s0 + $0xe8] sm:$0xff]  ;;  %v152_v43 = vadd.f32 %v108_v39, %v107_v38  ;;  %v111_v45 = vld [vmem:[%s2284_s0 + $0xf0] sm:$0xff]  ;;  %v112_v46 = vld [vmem:[%s2284_s0 + $0xf8] sm:$0xff] }
  0x1a   :  { %129 = vadd.xlane.f32.xlu1 %v128_v15  ;;  %v155_v44 = vadd.f32 %v110_v41, %v109_v40  ;;  %v158_v47 = vadd.f32 %v112_v46, %v111_v45  ;;  %v183_v51 = vld [vmem:[#allocation2 + $0x30] sm:$0xff]  ;;  %v184_v52 = vld [vmem:[#allocation2 + $0x38] sm:$0xff]  ;;  %v181_v56 = vld [vmem:[#allocation2 + $0x20] sm:$0xff] }
  0x1b   :  { %132 = vadd.xlane.f32.xlu2 %v131_v16  ;;  %264 = vmatpush.msra.mxu0 %v183_v51  ;;  %v182_v57 = vld [vmem:[#allocation2 + $0x28] sm:$0xff]  ;;  %v179_v58 = vld [vmem:[#allocation2 + $0x10] sm:$0xff]  ;;  %v180_v59 = vld [vmem:[#allocation2 + $0x18] sm:$0xff] }
  0x1c   :  { %117 = vadd.xlane.f32.xlu0 %v116_v17  ;;  %284 = vmatpush.msra.mxu1 %v184_v52  ;;  %v177_v60 = vld [vmem:[#allocation2] sm:$0xff]  ;;  %v178_v61 = vld [vmem:[#allocation2 + $0x8] sm:$0xff]  ;;  %v443_v63 = vld [vmem:[%s2287_s3 + $0x4b0] sm:$0xff]  ;;  %v207_v17 = vlaneseq }
  0x1d   :  { %265 = vmatpush.msra.mxu0 %v181_v56  ;;  %v444_v0 = vld [vmem:[%s2287_s3 + $0x4b8] sm:$0xff]  ;;  %v445_v1 = vld [vmem:[%s2287_s3 + $0x4c0] sm:$0xff]  ;;  %477 = vmatpush.msra.mxu2 %v443_v63  ;;  %v446_v4 = vld [vmem:[%s2287_s3 + $0x4c8] sm:$0xff] }
  0x1e   :  { %285 = vmatpush.msra.mxu1 %v182_v57  ;;  %497 = vmatpush.msra.mxu3 %v444_v0  ;;  %v433_v5 = vld [vmem:[%s2287_s3 + $0x460] sm:$0xff]  ;;  %v434_v6 = vld [vmem:[%s2287_s3 + $0x468] sm:$0xff]  ;;  %v435_v7 = vld [vmem:[%s2287_s3 + $0x470] sm:$0xff]  ;;  %v1721_v29 = vand.u32 127, %v207_v17 }
  0x1f   :  { %266 = vmatpush.msra.mxu0 %v179_v58  ;;  %v436_v8 = vld [vmem:[%s2287_s3 + $0x478] sm:$0xff]  ;;  %v423_v9 = vld [vmem:[%s2287_s3 + $0x410] sm:$0xff]  ;;  %478 = vmatpush.msra.mxu2 %v433_v5  ;;  %v425_v11 = vld [vmem:[%s2287_s3 + $0x420] sm:$0xff] }
  0x20   :  { %286 = vmatpush.msra.mxu1 %v180_v59  ;;  %498 = vmatpush.msra.mxu3 %v434_v6  ;;  %v424_v10 = vld [vmem:[%s2287_s3 + $0x418] sm:$0xff]  ;;  %v426_v12 = vld [vmem:[%s2287_s3 + $0x428] sm:$0xff]  ;;  %v413_v13 = vld [vmem:[%s2287_s3 + $0x3c0] sm:$0xff]  ;;  %v1816_v6 = vadd.s32 4294967272, %v1721_v29 }
  0x21   :  { %267 = vmatpush.msra.mxu0 %v177_v60  ;;  %v414_v14 = vld [vmem:[%s2287_s3 + $0x3c8] sm:$0xff]  ;;  %479 = vmatpush.msra.mxu2 %v423_v9  ;;  %v415_v15 = vld [vmem:[%s2287_s3 + $0x3d0] sm:$0xff]  ;;  %v416_v16 = vld [vmem:[%s2287_s3 + $0x3d8] sm:$0xff]  ;;  %v1796_v60 = vadd.s32 4294967280, %v1721_v29 }
  0x22   :  { %141 = vadd.xlane.f32.xlu1 %v140_v24  ;;  %287 = vmatpush.msra.mxu1 %v178_v61  ;;  %v403_v18 = vld [vmem:[%s2287_s3 + $0x370] sm:$0xff]  ;;  %v404_v19 = vld [vmem:[%s2287_s3 + $0x378] sm:$0xff]  ;;  %v405_v20 = vld [vmem:[%s2287_s3 + $0x380] sm:$0xff] }
  0x23   :  { %123 = vadd.xlane.f32.xlu2 %v122_v25  ;;  %517 = vmatpush.msrb.mxu0 %v445_v1  ;;  %v406_v21 = vld [vmem:[%s2287_s3 + $0x388] sm:$0xff]  ;;  %v393_v23 = vld [vmem:[%s2287_s3 + $0x320] sm:$0xff]  ;;  %v395_v27 = vld [vmem:[%s2287_s3 + $0x330] sm:$0xff] }
  0x24   :  { %138 = vadd.xlane.f32.xlu0 %v137_v26  ;;  %537 = vmatpush.msrb.mxu1 %v446_v4  ;;  %v394_v24 = vld [vmem:[%s2287_s3 + $0x328] sm:$0xff]  ;;  %v396_v28 = vld [vmem:[%s2287_s3 + $0x338] sm:$0xff]  ;;  %v383_v30 = vld [vmem:[%s2287_s3 + $0x2d0] sm:$0xff] }
  0x25   :  { %518 = vmatpush.msrb.mxu0 %v435_v7  ;;  %499 = vmatpush.msra.mxu3 %v424_v10  ;;  %v384_v31 = vld [vmem:[%s2287_s3 + $0x2d8] sm:$0xff]  ;;  %v385_v32 = vld [vmem:[%s2287_s3 + $0x2e0] sm:$0xff]  ;;  %v374_v38 = vld [vmem:[%s2287_s3 + $0x288] sm:$0xff] }
  0x26   :  { %538 = vmatpush.msrb.mxu1 %v436_v8  ;;  %480 = vmatpush.msra.mxu2 %v413_v13  ;;  %v373_v37 = vld [vmem:[%s2287_s3 + $0x280] sm:$0xff]  ;;  %v375_v39 = vld [vmem:[%s2287_s3 + $0x290] sm:$0xff]  ;;  %v376_v40 = vld [vmem:[%s2287_s3 + $0x298] sm:$0xff] }
  0x27   :  { %519 = vmatpush.msrb.mxu0 %v425_v11  ;;  %500 = vmatpush.msra.mxu3 %v414_v14  ;;  %v363_v41 = vld [vmem:[%s2287_s3 + $0x230] sm:$0xff]  ;;  %v366_v45 = vld [vmem:[%s2287_s3 + $0x248] sm:$0xff]  ;;  %v353_v52 = vld [vmem:[%s2287_s3 + $0x1e0] sm:$0xff] }
  0x28   :  { %539 = vmatpush.msrb.mxu1 %v426_v12  ;;  %481 = vmatpush.msra.mxu2 %v403_v18  ;;  %v355_v58 = vld [vmem:[%s2287_s3 + $0x1f0] sm:$0xff]  ;;  %v356_v59 = vld [vmem:[%s2287_s3 + $0x1f8] sm:$0xff]  ;;  %v345_v8 = vld [vmem:[%s2287_s3 + $0x1a0] sm:$0xff] }
  0x29   :  { %520 = vmatpush.msrb.mxu0 %v415_v15  ;;  %501 = vmatpush.msra.mxu3 %v404_v19  ;;  %v343_v1 = vld [vmem:[%s2287_s3 + $0x190] sm:$0xff]  ;;  %v346_v9 = vld [vmem:[%s2287_s3 + $0x1a8] sm:$0xff]  ;;  %v333_v13 = vld [vmem:[%s2287_s3 + $0x140] sm:$0xff] }
  0x2a   :  { %144 = vadd.xlane.f32.xlu1 %v143_v33  ;;  %540 = vmatpush.msrb.mxu1 %v416_v16  ;;  %v386_v33 = vld [vmem:[%s2287_s3 + $0x2e8] sm:$0xff]  ;;  %v335_v18 = vld [vmem:[%s2287_s3 + $0x150] sm:$0xff]  ;;  %v336_v19 = vld [vmem:[%s2287_s3 + $0x158] sm:$0xff] }
  0x2b   :  { %150 = vadd.xlane.f32.xlu2 %v149_v35  ;;  %521 = vmatpush.msrb.mxu0 %v405_v20  ;;  %v1737_v35 = vadd.s32 4294967288, %v1721_v29  ;;  %v334_v14 = vld [vmem:[%s2287_s3 + $0x148] sm:$0xff] }
  0x2c   :  { %135 = vadd.xlane.f32.xlu0 %v134_v34  ;;  %541 = vmatpush.msrb.mxu1 %v406_v21 }
  0x2d   :  { %482 = vmatpush.msra.mxu2 %v393_v23  ;;  %502 = vmatpush.msra.mxu3 %v394_v24  ;;  %v323_v23 = vld [vmem:[%s2287_s3 + $0xf0] sm:$0xff]  ;;  %v324_v24 = vld [vmem:[%s2287_s3 + $0xf8] sm:$0xff] }
  0x2e   :  { %522 = vmatpush.msrb.mxu0 %v395_v27  ;;  %542 = vmatpush.msrb.mxu1 %v396_v28  ;;  %v326_v27 = vld [vmem:[%s2287_s3 + $0x108] sm:$0xff] }
  0x2f   :  { %483 = vmatpush.msra.mxu2 %v383_v30  ;;  %503 = vmatpush.msra.mxu3 %v384_v31  ;;  %v313_v31 = vld [vmem:[%s2287_s3 + $0xa0] sm:$0xff] }
  0x30   :  { %523 = vmatpush.msrb.mxu0 %v385_v32  ;;  %543 = vmatpush.msrb.mxu1 %v386_v33  ;;  %v314_v32 = vld [vmem:[%s2287_s3 + $0xa8] sm:$0xff] }
  0x31   :  { %484 = vmatpush.msra.mxu2 %v373_v37  ;;  %504 = vmatpush.msra.mxu3 %v374_v38  ;;  %v315_v37 = vld [vmem:[%s2287_s3 + $0xb0] sm:$0xff]  ;;  %v316_v38 = vld [vmem:[%s2287_s3 + $0xb8] sm:$0xff] }
  0x32   :  { %147 = vadd.xlane.f32.xlu1 %v146_v42  ;;  %v364_v42 = vld [vmem:[%s2287_s3 + $0x238] sm:$0xff]  ;;  %524 = vmatpush.msrb.mxu0 %v375_v39 }
  0x33   :  { %156 = vadd.xlane.f32.xlu2 %v155_v44  ;;  %v365_v44 = vld [vmem:[%s2287_s3 + $0x240] sm:$0xff]  ;;  %544 = vmatpush.msrb.mxu1 %v376_v40 }
  0x34   :  { %153 = vadd.xlane.f32.xlu0 %v152_v43  ;;  %485 = vmatpush.msra.mxu2 %v363_v41 }
  0x35   :  { %505 = vmatpush.msra.mxu3 %v364_v42  ;;  %525 = vmatpush.msrb.mxu0 %v365_v44  ;;  %v304_v44 = vld [vmem:[%s2287_s3 + $0x58] sm:$0xff] }
  0x36   :  { %545 = vmatpush.msrb.mxu1 %v366_v45  ;;  %486 = vmatpush.msra.mxu2 %v353_v52  ;;  %v293_v52 = vld [vmem:[%s2287_s3] sm:$0xff] }
  0x37   :  { %526 = vmatpush.msrb.mxu0 %v355_v58  ;;  %v295_v58 = vld [vmem:[%s2287_s3 + $0x10] sm:$0xff] }
  0x38   :  { %546 = vmatpush.msrb.mxu1 %v356_v59  ;;  %487 = vmatpush.msra.mxu2 %v343_v1  ;;  %v296_v59 = vld [vmem:[%s2287_s3 + $0x18] sm:$0xff]  ;;  %v437_v1 = vld [vmem:[%s2287_s3 + $0x480] sm:$0xff] }
  0x39   :  { %527 = vmatpush.msrb.mxu0 %v345_v8  ;;  %v429_v8 = vld [vmem:[%s2287_s3 + $0x440] sm:$0xff] }
  0x3a   :  { %547 = vmatpush.msrb.mxu1 %v346_v9  ;;  %488 = vmatpush.msra.mxu2 %v333_v13  ;;  %v430_v9 = vld [vmem:[%s2287_s3 + $0x448] sm:$0xff]  ;;  %v407_v13 = vld [vmem:[%s2287_s3 + $0x390] sm:$0xff] }
  0x3b   :  { %528 = vmatpush.msrb.mxu0 %v335_v18  ;;  %v399_v18 = vld [vmem:[%s2287_s3 + $0x350] sm:$0xff] }
  0x3c   :  { %159 = vadd.xlane.f32.xlu0 %v158_v47  ;;  %548 = vmatpush.msrb.mxu1 %v336_v19  ;;  %v400_v19 = vld [vmem:[%s2287_s3 + $0x358] sm:$0xff] }
  0x3d   :  { %489 = vmatpush.msra.mxu2 %v323_v23  ;;  %v390_v23 = vld [vmem:[%s2287_s3 + $0x308] sm:$0xff] }
  0x3e   :  { %549 = vmatpush.msrb.mxu1 %v326_v27  ;;  %v380_v27 = vld [vmem:[%s2287_s3 + $0x2b8] sm:$0xff] }
  0x3f   :  { %490 = vmatpush.msra.mxu2 %v313_v31  ;;  %v370_v31 = vld [vmem:[%s2287_s3 + $0x268] sm:$0xff] }
  0x40   :  { %550 = vmatpush.msrb.mxu1 %v316_v38  ;;  %v349_v38 = vld [vmem:[%s2287_s3 + $0x1c0] sm:$0xff] }
  0x85   :  { %v1631_v48 = vpop.xlane.xlu1 %126 }
  0x86   :  { %v1633_v49 = vpop.xlane.xlu2 %120  ;;  %v165_v34 = vmul.f32 0.00390625, %v1631_v48 }
  0x87   :  { %v1635_v50 = vpop.xlane.xlu0 %114  ;;  %v1811_v4 = vmul.f32 0.00390625, %v1633_v49 }
  0x88   :  { %v1759_v43 = vmul.f32 0.00390625, %v1635_v50  ;;  %v222_v46 = vperm.slane %v165_v34, %v1721_v29 }
  0x89   :  { %v215_v28 = vperm.slane %v1811_v4, %v1796_v60  ;;  %v439_v4 = vld [vmem:[%s2287_s3 + $0x490] sm:$0xff] }
  0x8a   :  { %v209_v5 = vperm.slane %v1759_v43, %v1721_v29  ;;  %v303_v43 = vld [vmem:[%s2287_s3 + $0x50] sm:$0xff] }
  0x8b   :  { %491 = vmatpush.msra.mxu2 %v303_v43  ;;  %v340_v43 = vld [vmem:[%s2287_s3 + $0x178] sm:$0xff] }
  0x8d   :  { %v1637_v53 = vpop.xlane.xlu1 %129  ;;  %492 = vmatpush.msra.mxu2 %v293_v52  ;;  %v320_v52 = vld [vmem:[%s2287_s3 + $0xd8] sm:$0xff] }
  0x8e   :  { %v1639_v54 = vpop.xlane.xlu2 %132  ;;  %v166_v36 = vmul.f32 0.00390625, %v1637_v53  ;;  %v354_v53 = vld [vmem:[%s2287_s3 + $0x1e8] sm:$0xff] }
  0x8f   :  { %v1641_v55 = vpop.xlane.xlu0 %117  ;;  %v1770_v48 = vmul.f32 0.00390625, %v1639_v54  ;;  %506 = vmatpush.msra.mxu3 %v354_v53  ;;  %v294_v53 = vld [vmem:[%s2287_s3 + $0x8] sm:$0xff] }
  0x90   :  { %v223_v47 = vperm.slane %v166_v36, %v1737_v35  ;;  %v1773_v50 = vmul.f32 0.00390625, %v1641_v55 }
  0x91   :  { %v225_v10 = vperm.slane %v1770_v48, %v1796_v60  ;;  %v306_v48 = vld [vmem:[%s2287_s3 + $0x68] sm:$0xff] }
  0x92   :  { %v224_v49 = vsel %vm212_vm0, %v223_v47, %v222_v46  ;;  %v211_v11 = vperm.slane %v1773_v50, %v1737_v35  ;;  %v305_v47 = vld [vmem:[%s2287_s3 + $0x60] sm:$0xff]  ;;  %551 = vmatpush.msrb.mxu1 %v306_v48 }
  0x93   :  { %v226_v33 = vsel %vm216_vm1, %v225_v10, %v224_v49  ;;  %v417_v49 = vld [vmem:[%s2287_s3 + $0x3e0] sm:$0xff]  ;;  %v418_v10 = vld [vmem:[%s2287_s3 + $0x3e8] sm:$0xff] }
  0x94   :  { %552 = vmatpush.msrb.mxu1 %v296_v59  ;;  %v317_v48 = vld [vmem:[%s2287_s3 + $0xc0] sm:$0xff]  ;;  %v299_v59 = vld [vmem:[%s2287_s3 + $0x30] sm:$0xff] }
  0x95   :  { %v1643_v62 = vpop.xlane.xlu1 %141 }
  0x96   :  { %v1654_v2 = vpop.xlane.xlu2 %123  ;;  %v1782_v56 = vmul.f32 0.00390625, %v1643_v62 }
  0x97   :  { %v1656_v3 = vpop.xlane.xlu0 %138  ;;  %v164_v12 = vmul.f32 0.00390625, %v1654_v2 }
  0x98   :  { %v1785_v54 = vmul.f32 0.00390625, %v1656_v3  ;;  %v344_v3 = vld [vmem:[%s2287_s3 + $0x198] sm:$0xff]  ;;  %v230_v15 = vperm.slane %v1782_v56, %v1737_v35 }
  0x99   :  { %507 = vmatpush.msra.mxu3 %v344_v3  ;;  %v219_v30 = vperm.slane %v164_v12, %v1816_v6  ;;  %v438_v3 = vld [vmem:[%s2287_s3 + $0x488] sm:$0xff]  ;;  %v420_v12 = vld [vmem:[%s2287_s3 + $0x3f8] sm:$0xff] }
  0x9a   :  { %v229_v16 = vperm.slane %v1785_v54, %v1721_v29 }
  0x9b   :  { %508 = vmatpush.msra.mxu3 %v334_v14  ;;  %v408_v14 = vld [vmem:[%s2287_s3 + $0x398] sm:$0xff] }
  0x9c   :  { %v231_v34 = vsel %vm212_vm0, %v230_v15, %v229_v16  ;;  %v409_v15 = vld [vmem:[%s2287_s3 + $0x3a0] sm:$0xff]  ;;  %v410_v16 = vld [vmem:[%s2287_s3 + $0x3a8] sm:$0xff] }
  0x9d   :  { %v145_v22 = vpop.xlane.xlu1 %144  ;;  %509 = vmatpush.msra.mxu3 %v324_v24  ;;  %v377_v24 = vld [vmem:[%s2287_s3 + $0x2a0] sm:$0xff] }
  0x9e   :  { %v151_v26 = vpop.xlane.xlu2 %150  ;;  %v1787_v55 = vmul.f32 0.00390625, %v145_v22 }
  0x9f   :  { %v136_v25 = vpop.xlane.xlu0 %135  ;;  %v1800_v62 = vmul.f32 0.00390625, %v151_v26  ;;  %v325_v26 = vld [vmem:[%s2287_s3 + $0x100] sm:$0xff]  ;;  %510 = vmatpush.msra.mxu3 %v314_v32 }
  0xa0   :  { %v1798_v61 = vmul.f32 0.00390625, %v136_v25  ;;  %v232_v17 = vperm.slane %v1787_v55, %v1796_v60  ;;  %529 = vmatpush.msrb.mxu0 %v325_v26  ;;  %v379_v26 = vld [vmem:[%s2287_s3 + $0x2b0] sm:$0xff]  ;;  %v357_v32 = vld [vmem:[%s2287_s3 + $0x200] sm:$0xff] }
  0xa1   :  { %v236_v21 = vperm.slane %v1800_v62, %v1721_v29  ;;  %v213_v29 = vsel %vm212_vm0, %v211_v11, %v209_v5  ;;  %511 = vmatpush.msra.mxu3 %v304_v44  ;;  %v448_v62 = vld [vmem:[%s2287_s3 + $0x4d8] sm:$0xff]  ;;  %v419_v11 = vld [vmem:[%s2287_s3 + $0x3f0] sm:$0xff] }
  0xa2   :  { %v227_v20 = vperm.slane %v1798_v61, %v1816_v6  ;;  %v233_v39 = vsel %vm216_vm1, %v232_v17, %v231_v34  ;;  %v217_v45 = vsel %vm216_vm1, %v215_v28, %v213_v29  ;;  %530 = vmatpush.msrb.mxu0 %v315_v37  ;;  %v447_v61 = vld [vmem:[%s2287_s3 + $0x4d0] sm:$0xff]  ;;  %v440_v5 = vld [vmem:[%s2287_s3 + $0x498] sm:$0xff]  ;;  %v397_v17 = vld [vmem:[%s2287_s3 + $0x340] sm:$0xff] }
  0xa3   :  { %v221_v50 = vsel %vm220_vm2, %v219_v30, %v217_v45  ;;  %512 = vmatpush.msra.mxu3 %v294_v53  ;;  %557 = vmatpush.msrb.mxu2 %v447_v61  ;;  %v367_v28 = vld [vmem:[%s2287_s3 + $0x250] sm:$0xff]  ;;  %v368_v29 = vld [vmem:[%s2287_s3 + $0x258] sm:$0xff]  ;;  %v369_v30 = vld [vmem:[%s2287_s3 + $0x260] sm:$0xff] }
  0xa4   :  { %v228_v40 = vsel %vm220_vm2, %v227_v20, %v226_v33  ;;  %531 = vmatpush.msrb.mxu0 %v305_v47  ;;  %v387_v20 = vld [vmem:[%s2287_s3 + $0x2f0] sm:$0xff]  ;;  %v358_v33 = vld [vmem:[%s2287_s3 + $0x208] sm:$0xff]  ;;  %v348_v37 = vld [vmem:[%s2287_s3 + $0x1b8] sm:$0xff] }
  0xa5   :  { %v148_v51 = vpop.xlane.xlu1 %147  ;;  %v244_v54 = vsel %vm243_vm3, %v228_v40, %v221_v50  ;;  %577 = vmatpush.msrb.mxu3 %v448_v62  ;;  %558 = vmatpush.msrb.mxu2 %v437_v1  ;;  %v359_v34 = vld [vmem:[%s2287_s3 + $0x210] sm:$0xff]  ;;  %v337_v40 = vld [vmem:[%s2287_s3 + $0x160] sm:$0xff]  ;;  %v328_v45 = vld [vmem:[%s2287_s3 + $0x118] sm:$0xff] }
  0xa6   :  { %v157_v0 = vpop.xlane.xlu2 %156  ;;  %v172_v7 = vmul.f32 0.00390625, %v148_v51  ;;  %532 = vmatpush.msrb.mxu0 %v295_v58  ;;  %v327_v44 = vld [vmem:[%s2287_s3 + $0x110] sm:$0xff]  ;;  %v330_v47 = vld [vmem:[%s2287_s3 + $0x128] sm:$0xff]  ;;  %v185_v61 = vld [vmem:[%s2286_s2] sm:$0x3] }
  0xa7   :  { %v154_v57 = vpop.xlane.xlu0 %153  ;;  %v175_v2 = vmul.f32 0.00390625, %v157_v0  ;;  %v450_v0 = vld [vmem:[%s2287_s3 + $0x4e8] sm:$0xff]  ;;  %578 = vmatpush.msrb.mxu3 %v438_v3  ;;  %v307_v53 = vld [vmem:[%s2287_s3 + $0x70] sm:$0xff]  ;;  %v187_v62 = vperm.slane %v185_v61, 0 }
  0xa8   :  { %v1802_v63 = vmul.f32 0.00390625, %v154_v57  ;;  %v234_v25 = vperm.slane %v172_v7, %v1816_v6  ;;  %v428_v7 = vld [vmem:[%s2287_s3 + $0x438] sm:$0xff]  ;;  %v318_v50 = vld [vmem:[%s2287_s3 + $0xc8] sm:$0xff] }
  0xa9   :  { %579 = vmatpush.msrb.mxu3 %v428_v7  ;;  %v298_v58 = vld [vmem:[%s2287_s3 + $0x28] sm:$0xff] }
  0xaa   :  { %v237_v22 = vperm.slane %v1802_v63, %v1737_v35  ;;  %v239_v35 = vperm.slane %v175_v2, %v1796_v60  ;;  %v235_v46 = vsel %vm220_vm2, %v234_v25, %v233_v39  ;;  %v449_v63 = vld [vmem:[%s2287_s3 + $0x4e0] sm:$0xff]  ;;  %v398_v2 = vld [vmem:[%s2287_s3 + $0x348] sm:$0xff] }
  0xab   :  { %v246_v57 = vsel %vm245_vm4, %v235_v46, %v244_v54  ;;  %580 = vmatpush.msrb.mxu3 %v418_v10  ;;  %v378_v25 = vld [vmem:[%s2287_s3 + $0x2a8] sm:$0xff]  ;;  %v329_v46 = vld [vmem:[%s2287_s3 + $0x120] sm:$0xff] }
  0xac   :  { %v238_v41 = vsel %vm212_vm0, %v237_v22, %v236_v21  ;;  %v388_v21 = vld [vmem:[%s2287_s3 + $0x2f8] sm:$0xff]  ;;  %v389_v22 = vld [vmem:[%s2287_s3 + $0x300] sm:$0xff]  ;;  %v350_v39 = vld [vmem:[%s2287_s3 + $0x1c8] sm:$0xff] }
  0xad   :  { %v240_v56 = vsel %vm216_vm1, %v239_v35, %v238_v41  ;;  %581 = vmatpush.msrb.mxu3 %v408_v14  ;;  %v360_v35 = vld [vmem:[%s2287_s3 + $0x218] sm:$0xff]  ;;  %v338_v41 = vld [vmem:[%s2287_s3 + $0x168] sm:$0xff]  ;;  %v309_v54 = vld [vmem:[%s2287_s3 + $0x80] sm:$0xff] }
  0xae   :  { %v752_v7 = vld [vmem:[#allocation7 + $0x258] sm:$0xff]  ;;  %v747_v10 = vld [vmem:[#allocation7 + $0x230] sm:$0xff]  ;;  %v742_v14 = vld [vmem:[#allocation7 + $0x208] sm:$0xff] }
  0xaf   :  { %v160_v36 = vpop.xlane.xlu0 %159  ;;  %582 = vmatpush.msrb.mxu3 %v398_v2  ;;  %v737_v2 = vld [vmem:[#allocation7 + $0x1e0] sm:$0xff] }
  0xb0   :  { %v176_v42 = vmul.f32 0.00390625, %v160_v36  ;;  %v347_v36 = vld [vmem:[%s2287_s3 + $0x1b0] sm:$0xff] }
  0xb1   :  { %583 = vmatpush.msrb.mxu3 %v388_v21  ;;  %v732_v21 = vld [vmem:[#allocation7 + $0x1b8] sm:$0xff] }
  0xb2   :  { %v241_v51 = vperm.slane %v176_v42, %v1816_v6  ;;  %v427_v6 = vld [vmem:[%s2287_s3 + $0x430] sm:$0xff] }
  0xb3   :  { %559 = vmatpush.msrb.mxu2 %v427_v6  ;;  %584 = vmatpush.msrb.mxu3 %v378_v25  ;;  %v339_v42 = vld [vmem:[%s2287_s3 + $0x170] sm:$0xff]  ;;  %v452_v6 = vld [vmem:[%s2287_s3 + $0x4f8] sm:$0xff] }
  0xb4   :  { %v242_v55 = vsel %vm220_vm2, %v241_v51, %v240_v56  ;;  %v319_v51 = vld [vmem:[%s2287_s3 + $0xd0] sm:$0xff]  ;;  %v308_v56 = vld [vmem:[%s2287_s3 + $0x78] sm:$0xff] }
  0xb5   :  { %v248_v60 = vsel %vm247_vm5, %v242_v55, %v246_v57  ;;  %560 = vmatpush.msrb.mxu2 %v417_v49  ;;  %585 = vmatpush.msrb.mxu3 %v368_v29  ;;  %v310_v55 = vld [vmem:[%s2287_s3 + $0x88] sm:$0xff]  ;;  %v297_v57 = vld [vmem:[%s2287_s3 + $0x20] sm:$0xff]  ;;  %v722_v29 = vld [vmem:[#allocation7 + $0x168] sm:$0xff] }
  0xb6   :  { %1288 = vmatmul.msk.f32.vlgmr.msra.gmra.mxu0 %vm249_vm6, %v248_v60  ;;  %1289 = vmatmul.msk.f32.vlgmr.msra.gmra.mxu1 %vm249_vm6, %v248_v60  ;;  %v300_v60 = vld [vmem:[%s2287_s3 + $0x38] sm:$0xff]  ;;  %v442_v49 = vld [vmem:[%s2287_s3 + $0x4a8] sm:$0xff] }
  0xb7   :  { %597 = vmatpush.msra.mxu0 %v449_v63  ;;  %617 = vmatpush.msra.mxu1 %v450_v0  ;;  %v188_v63 = vperm.slane %v185_v61, 1  ;;  %v727_v25 = vld [vmem:[#allocation7 + $0x190] sm:$0xff] }
  0xb8   :  { %561 = vmatpush.msrb.mxu2 %v407_v13  ;;  %586 = vmatpush.msrb.mxu3 %v358_v33  ;;  %v432_v13 = vld [vmem:[%s2287_s3 + $0x458] sm:$0xff]  ;;  %v717_v33 = vld [vmem:[#allocation7 + $0x140] sm:$0xff] }
  0xb9   :  { %598 = vmatpush.msra.mxu0 %v439_v4  ;;  %618 = vmatpush.msra.mxu1 %v440_v5  ;;  %v451_v5 = vld [vmem:[%s2287_s3 + $0x4f0] sm:$0xff]  ;;  %v312_v61 = vld [vmem:[%s2287_s3 + $0x98] sm:$0xff] }
  0xba   :  { %562 = vmatpush.msrb.mxu2 %v397_v17  ;;  %587 = vmatpush.msrb.mxu3 %v348_v37  ;;  %v422_v17 = vld [vmem:[%s2287_s3 + $0x408] sm:$0xff] }
  0xbb   :  { %599 = vmatpush.msra.mxu0 %v429_v8  ;;  %619 = vmatpush.msra.mxu1 %v430_v9  ;;  %v753_v8 = vld [vmem:[#allocation7 + $0x260] sm:$0xff]  ;;  %v441_v9 = vld [vmem:[%s2287_s3 + $0x4a0] sm:$0xff] }
  0xbc   :  { %563 = vmatpush.msrb.mxu2 %v387_v20  ;;  %588 = vmatpush.msrb.mxu3 %v338_v41  ;;  %v412_v20 = vld [vmem:[%s2287_s3 + $0x3b8] sm:$0xff]  ;;  %v712_v37 = vld [vmem:[#allocation7 + $0x118] sm:$0xff] }
  0xbd   :  { %600 = vmatpush.msra.mxu0 %v419_v11  ;;  %620 = vmatpush.msra.mxu1 %v420_v12  ;;  %v748_v11 = vld [vmem:[#allocation7 + $0x238] sm:$0xff]  ;;  %v431_v12 = vld [vmem:[%s2287_s3 + $0x450] sm:$0xff]  ;;  %v707_v41 = vld [vmem:[#allocation7 + $0xf0] sm:$0xff] }
  0xbe   :  { %564 = vmatpush.msrb.mxu2 %v377_v24  ;;  %589 = vmatpush.msrb.mxu3 %v328_v45  ;;  %v402_v24 = vld [vmem:[%s2287_s3 + $0x368] sm:$0xff]  ;;  %v702_v45 = vld [vmem:[#allocation7 + $0xc8] sm:$0xff] }
  0xbf   :  { %601 = vmatpush.msra.mxu0 %v409_v15  ;;  %621 = vmatpush.msra.mxu1 %v410_v16  ;;  %v743_v15 = vld [vmem:[#allocation7 + $0x210] sm:$0xff] }
  0xc0   :  { %565 = vmatpush.msrb.mxu2 %v367_v28  ;;  %590 = vmatpush.msrb.mxu3 %v318_v50  ;;  %v421_v16 = vld [vmem:[%s2287_s3 + $0x400] sm:$0xff]  ;;  %v392_v28 = vld [vmem:[%s2287_s3 + $0x318] sm:$0xff]  ;;  %v697_v50 = vld [vmem:[#allocation7 + $0xa0] sm:$0xff] }
  0xc1   :  { %602 = vmatpush.msra.mxu0 %v399_v18  ;;  %622 = vmatpush.msra.mxu1 %v400_v19  ;;  %v738_v18 = vld [vmem:[#allocation7 + $0x1e8] sm:$0xff] }
  0xc2   :  { %566 = vmatpush.msrb.mxu2 %v357_v32  ;;  %591 = vmatpush.msrb.mxu3 %v308_v56  ;;  %v411_v19 = vld [vmem:[%s2287_s3 + $0x3b0] sm:$0xff]  ;;  %v382_v32 = vld [vmem:[%s2287_s3 + $0x2c8] sm:$0xff] }
  0xc3   :  { %603 = vmatpush.msra.mxu0 %v389_v22  ;;  %623 = vmatpush.msra.mxu1 %v390_v23  ;;  %v733_v22 = vld [vmem:[#allocation7 + $0x1c0] sm:$0xff]  ;;  %v401_v23 = vld [vmem:[%s2287_s3 + $0x360] sm:$0xff] }
  0xc4   :  { %567 = vmatpush.msrb.mxu2 %v347_v36  ;;  %592 = vmatpush.msrb.mxu3 %v298_v58  ;;  %v372_v36 = vld [vmem:[%s2287_s3 + $0x278] sm:$0xff]  ;;  %v692_v56 = vld [vmem:[#allocation7 + $0x78] sm:$0xff] }
  0xc5   :  { %604 = vmatpush.msra.mxu0 %v379_v26  ;;  %624 = vmatpush.msra.mxu1 %v380_v27  ;;  %v728_v26 = vld [vmem:[#allocation7 + $0x198] sm:$0xff]  ;;  %v391_v27 = vld [vmem:[%s2287_s3 + $0x310] sm:$0xff]  ;;  %v687_v58 = vld [vmem:[#allocation7 + $0x50] sm:$0xff] }
  0xc6   :  { %568 = vmatpush.msrb.mxu2 %v337_v40  ;;  %v362_v40 = vld [vmem:[%s2287_s3 + $0x228] sm:$0xff] }
  0xc7   :  { %605 = vmatpush.msra.mxu0 %v369_v30  ;;  %625 = vmatpush.msra.mxu1 %v370_v31  ;;  %v723_v30 = vld [vmem:[#allocation7 + $0x170] sm:$0xff] }
  0xc8   :  { %569 = vmatpush.msrb.mxu2 %v327_v44  ;;  %v381_v31 = vld [vmem:[%s2287_s3 + $0x2c0] sm:$0xff]  ;;  %v352_v44 = vld [vmem:[%s2287_s3 + $0x1d8] sm:$0xff] }
  0xc9   :  { %606 = vmatpush.msra.mxu0 %v359_v34  ;;  %626 = vmatpush.msra.mxu1 %v360_v35  ;;  %v718_v34 = vld [vmem:[#allocation7 + $0x148] sm:$0xff] }
  0xca   :  { %570 = vmatpush.msrb.mxu2 %v317_v48  ;;  %v371_v35 = vld [vmem:[%s2287_s3 + $0x270] sm:$0xff]  ;;  %v342_v48 = vld [vmem:[%s2287_s3 + $0x188] sm:$0xff] }
  0xcb   :  { %607 = vmatpush.msra.mxu0 %v349_v38  ;;  %627 = vmatpush.msra.mxu1 %v350_v39  ;;  %v713_v38 = vld [vmem:[#allocation7 + $0x120] sm:$0xff]  ;;  %v361_v39 = vld [vmem:[%s2287_s3 + $0x220] sm:$0xff] }
  0xcc   :  { %571 = vmatpush.msrb.mxu2 %v307_v53  ;;  %v332_v53 = vld [vmem:[%s2287_s3 + $0x138] sm:$0xff] }
  0xcd   :  { %608 = vmatpush.msra.mxu0 %v339_v42  ;;  %628 = vmatpush.msra.mxu1 %v340_v43  ;;  %v708_v42 = vld [vmem:[#allocation7 + $0xf8] sm:$0xff]  ;;  %v351_v43 = vld [vmem:[%s2287_s3 + $0x1d0] sm:$0xff] }
  0xce   :  { %572 = vmatpush.msrb.mxu2 %v297_v57  ;;  %v322_v57 = vld [vmem:[%s2287_s3 + $0xe8] sm:$0xff] }
  0xcf   :  { %609 = vmatpush.msra.mxu0 %v329_v46  ;;  %629 = vmatpush.msra.mxu1 %v330_v47  ;;  %v703_v46 = vld [vmem:[#allocation7 + $0xd0] sm:$0xff] }
  0xd0   :  { %v341_v47 = vld [vmem:[%s2287_s3 + $0x180] sm:$0xff] }
  0xd1   :  { %610 = vmatpush.msra.mxu0 %v319_v51  ;;  %630 = vmatpush.msra.mxu1 %v320_v52  ;;  %v698_v51 = vld [vmem:[#allocation7 + $0xa8] sm:$0xff] }
  0xd2   :  { %v331_v52 = vld [vmem:[%s2287_s3 + $0x130] sm:$0xff] }
  0xd3   :  { %611 = vmatpush.msra.mxu0 %v309_v54  ;;  %631 = vmatpush.msra.mxu1 %v310_v55  ;;  %v693_v54 = vld [vmem:[#allocation7 + $0x80] sm:$0xff]  ;;  %v321_v55 = vld [vmem:[%s2287_s3 + $0xe0] sm:$0xff] }
  0xd5   :  { %612 = vmatpush.msra.mxu0 %v299_v59  ;;  %632 = vmatpush.msra.mxu1 %v300_v60  ;;  %v688_v59 = vld [vmem:[#allocation7 + $0x58] sm:$0xff]  ;;  %v311_v60 = vld [vmem:[%s2287_s3 + $0x90] sm:$0xff] }
 0x133   :  { %v269_v0 = vpop.f32.mrf.mxu0  ;;  %v289_v1 = vpop.f32.mrf.mxu1 }
 0x134   :  { %v2117_v3 = vadd.f32 %v269_v0, %v187_v62  ;;  %v290_v4 = vadd.f32 %v289_v1, %v188_v63  ;;  %v682_v62 = vld [vmem:[#allocation7 + $0x28] sm:$0xff]  ;;  %v683_v63 = vld [vmem:[#allocation7 + $0x30] sm:$0xff]  ;;  %v302_v1 = vld [vmem:[%s2287_s3 + $0x48] sm:$0xff] }
 0x135   :  { %v301_v0 = vld [vmem:[%s2287_s3 + $0x40] sm:$0xff] }
 0x136   :  { %292 = vst [vmem:[#allocation9] sm:$0xf] %v290_v4  ;;  %493 = vmatmul.f32.vlgmr.msra.gmra.mxu2 %v2117_v3  ;;  %513 = vmatmul.f32.vlgmr.msra.gmra.mxu3 %v2117_v3  ;;  %v677_v4 = vld [vmem:[#allocation7] sm:$0xff] }
 0x137   :  { %533 = vmatmul.f32.vlgmr.msrb.gmra.mxu0 %v2117_v3  ;;  %553 = vmatmul.f32.vlgmr.msrb.gmra.mxu1 %v2117_v3  ;;  %1275 = dma.vmem_to_hbm [thread:$0]  %s1271_s13, 64, %s1273_s15, [#allocation10]  }
 0x138   :  { %637 = vmatpush.msra.mxu2 %v451_v5  ;;  %657 = vmatpush.msra.mxu3 %v452_v6  ;;  %v678_v5 = vld [vmem:[#allocation7 + $0x8] sm:$0xff] }
 0x139   :  { %757 = vmatpush.msrb.mxu0 %v752_v7  ;;  %777 = vmatpush.msrb.mxu1 %v753_v8  ;;  %v754_v6 = vld [vmem:[#allocation7 + $0x268] sm:$0xff]  ;;  %v755_v7 = vld [vmem:[#allocation7 + $0x270] sm:$0xff]  ;;  %v756_v8 = vld [vmem:[#allocation7 + $0x278] sm:$0xff] }
 0x13a   :  { %638 = vmatpush.msra.mxu2 %v441_v9  ;;  %658 = vmatpush.msra.mxu3 %v442_v49  ;;  %v749_v9 = vld [vmem:[#allocation7 + $0x240] sm:$0xff]  ;;  %v750_v49 = vld [vmem:[#allocation7 + $0x248] sm:$0xff] }
 0x13b   :  { %758 = vmatpush.msrb.mxu0 %v747_v10  ;;  %778 = vmatpush.msrb.mxu1 %v748_v11  ;;  %v751_v10 = vld [vmem:[#allocation7 + $0x250] sm:$0xff]  ;;  %v744_v11 = vld [vmem:[#allocation7 + $0x218] sm:$0xff] }
 0x13c   :  { %639 = vmatpush.msra.mxu2 %v431_v12  ;;  %659 = vmatpush.msra.mxu3 %v432_v13  ;;  %v745_v12 = vld [vmem:[#allocation7 + $0x220] sm:$0xff]  ;;  %v746_v13 = vld [vmem:[#allocation7 + $0x228] sm:$0xff] }
 0x13d   :  { %759 = vmatpush.msrb.mxu0 %v742_v14  ;;  %779 = vmatpush.msrb.mxu1 %v743_v15  ;;  %v739_v14 = vld [vmem:[#allocation7 + $0x1f0] sm:$0xff]  ;;  %v740_v15 = vld [vmem:[#allocation7 + $0x1f8] sm:$0xff] }
 0x13e   :  { %640 = vmatpush.msra.mxu2 %v421_v16  ;;  %660 = vmatpush.msra.mxu3 %v422_v17  ;;  %v741_v16 = vld [vmem:[#allocation7 + $0x200] sm:$0xff]  ;;  %v734_v17 = vld [vmem:[#allocation7 + $0x1c8] sm:$0xff] }
 0x13f   :  { %760 = vmatpush.msrb.mxu0 %v737_v2  ;;  %780 = vmatpush.msrb.mxu1 %v738_v18  ;;  %v735_v2 = vld [vmem:[#allocation7 + $0x1d0] sm:$0xff]  ;;  %v736_v18 = vld [vmem:[#allocation7 + $0x1d8] sm:$0xff] }
 0x140   :  { %573 = vmatmul.f32.vlgmr.msrb.gmra.mxu2 %v2117_v3  ;;  %593 = vmatmul.f32.vlgmr.msrb.gmra.mxu3 %v2117_v3 }
 0x141   :  { %613 = vmatmul.f32.vlgmr.msra.gmra.mxu0 %v2117_v3  ;;  %633 = vmatmul.f32.vlgmr.msra.gmra.mxu1 %v2117_v3 }
 0x142   :  { %641 = vmatpush.msra.mxu2 %v411_v19  ;;  %661 = vmatpush.msra.mxu3 %v412_v20  ;;  %v729_v19 = vld [vmem:[#allocation7 + $0x1a0] sm:$0xff]  ;;  %v730_v20 = vld [vmem:[#allocation7 + $0x1a8] sm:$0xff] }
 0x143   :  { %761 = vmatpush.msrb.mxu0 %v732_v21  ;;  %781 = vmatpush.msrb.mxu1 %v733_v22  ;;  %v731_v21 = vld [vmem:[#allocation7 + $0x1b0] sm:$0xff]  ;;  %v724_v22 = vld [vmem:[#allocation7 + $0x178] sm:$0xff] }
 0x144   :  { %642 = vmatpush.msra.mxu2 %v401_v23  ;;  %662 = vmatpush.msra.mxu3 %v402_v24  ;;  %v725_v23 = vld [vmem:[#allocation7 + $0x180] sm:$0xff]  ;;  %v726_v24 = vld [vmem:[#allocation7 + $0x188] sm:$0xff] }
 0x145   :  { %762 = vmatpush.msrb.mxu0 %v727_v25  ;;  %782 = vmatpush.msrb.mxu1 %v728_v26  ;;  %v719_v25 = vld [vmem:[#allocation7 + $0x150] sm:$0xff]  ;;  %v720_v26 = vld [vmem:[#allocation7 + $0x158] sm:$0xff] }
 0x146   :  { %643 = vmatpush.msra.mxu2 %v391_v27  ;;  %663 = vmatpush.msra.mxu3 %v392_v28  ;;  %v721_v27 = vld [vmem:[#allocation7 + $0x160] sm:$0xff]  ;;  %v714_v28 = vld [vmem:[#allocation7 + $0x128] sm:$0xff] }
 0x147   :  { %763 = vmatpush.msrb.mxu0 %v722_v29  ;;  %783 = vmatpush.msrb.mxu1 %v723_v30  ;;  %v715_v29 = vld [vmem:[#allocation7 + $0x130] sm:$0xff]  ;;  %v716_v30 = vld [vmem:[#allocation7 + $0x138] sm:$0xff] }
 0x148   :  { %644 = vmatpush.msra.mxu2 %v381_v31  ;;  %664 = vmatpush.msra.mxu3 %v382_v32  ;;  %v709_v31 = vld [vmem:[#allocation7 + $0x100] sm:$0xff]  ;;  %v710_v32 = vld [vmem:[#allocation7 + $0x108] sm:$0xff] }
 0x149   :  { %764 = vmatpush.msrb.mxu0 %v717_v33  ;;  %784 = vmatpush.msrb.mxu1 %v718_v34  ;;  %v711_v33 = vld [vmem:[#allocation7 + $0x110] sm:$0xff]  ;;  %v704_v34 = vld [vmem:[#allocation7 + $0xd8] sm:$0xff] }
 0x14a   :  { %645 = vmatpush.msra.mxu2 %v371_v35  ;;  %665 = vmatpush.msra.mxu3 %v372_v36  ;;  %v705_v35 = vld [vmem:[#allocation7 + $0xe0] sm:$0xff]  ;;  %v706_v36 = vld [vmem:[#allocation7 + $0xe8] sm:$0xff] }
 0x14b   :  { %765 = vmatpush.msrb.mxu0 %v712_v37  ;;  %785 = vmatpush.msrb.mxu1 %v713_v38  ;;  %v699_v37 = vld [vmem:[#allocation7 + $0xb0] sm:$0xff]  ;;  %v700_v38 = vld [vmem:[#allocation7 + $0xb8] sm:$0xff] }
 0x14c   :  { %646 = vmatpush.msra.mxu2 %v361_v39  ;;  %666 = vmatpush.msra.mxu3 %v362_v40  ;;  %v701_v39 = vld [vmem:[#allocation7 + $0xc0] sm:$0xff]  ;;  %v694_v40 = vld [vmem:[#allocation7 + $0x88] sm:$0xff] }
 0x14d   :  { %766 = vmatpush.msrb.mxu0 %v707_v41  ;;  %786 = vmatpush.msrb.mxu1 %v708_v42  ;;  %v695_v41 = vld [vmem:[#allocation7 + $0x90] sm:$0xff]  ;;  %v696_v42 = vld [vmem:[#allocation7 + $0x98] sm:$0xff] }
 0x14e   :  { %647 = vmatpush.msra.mxu2 %v351_v43  ;;  %667 = vmatpush.msra.mxu3 %v352_v44  ;;  %v689_v43 = vld [vmem:[#allocation7 + $0x60] sm:$0xff]  ;;  %v690_v44 = vld [vmem:[#allocation7 + $0x68] sm:$0xff] }
 0x14f   :  { %767 = vmatpush.msrb.mxu0 %v702_v45  ;;  %787 = vmatpush.msrb.mxu1 %v703_v46  ;;  %v691_v45 = vld [vmem:[#allocation7 + $0x70] sm:$0xff]  ;;  %v684_v46 = vld [vmem:[#allocation7 + $0x38] sm:$0xff] }
 0x150   :  { %648 = vmatpush.msra.mxu2 %v341_v47  ;;  %668 = vmatpush.msra.mxu3 %v342_v48  ;;  %v685_v47 = vld [vmem:[#allocation7 + $0x40] sm:$0xff]  ;;  %v686_v48 = vld [vmem:[#allocation7 + $0x48] sm:$0xff] }
 0x151   :  { %768 = vmatpush.msrb.mxu0 %v697_v50  ;;  %788 = vmatpush.msrb.mxu1 %v698_v51  ;;  %v679_v50 = vld [vmem:[#allocation7 + $0x10] sm:$0xff]  ;;  %v680_v51 = vld [vmem:[#allocation7 + $0x18] sm:$0xff] }
 0x152   :  { %649 = vmatpush.msra.mxu2 %v331_v52  ;;  %669 = vmatpush.msra.mxu3 %v332_v53  ;;  %v681_v52 = vld [vmem:[#allocation7 + $0x20] sm:$0xff] }
 0x153   :  { %769 = vmatpush.msrb.mxu0 %v692_v56  ;;  %789 = vmatpush.msrb.mxu1 %v693_v54 }
 0x154   :  { %650 = vmatpush.msra.mxu2 %v321_v55  ;;  %670 = vmatpush.msra.mxu3 %v322_v57  ;;  %v453_v55 = vld [vmem:[#allocation5] sm:$0xff] }
 0x155   :  { %770 = vmatpush.msrb.mxu0 %v687_v58  ;;  %790 = vmatpush.msrb.mxu1 %v688_v59  ;;  %v464_v57 = vperm.slane %v453_v55, 7  ;;  %v459_v58 = vperm.slane %v453_v55, 2 }
 0x156   :  { %651 = vmatpush.msra.mxu2 %v311_v60  ;;  %671 = vmatpush.msra.mxu3 %v312_v61  ;;  %v462_v61 = vperm.slane %v453_v55, 5 }
 0x157   :  { %771 = vmatpush.msrb.mxu0 %v682_v62  ;;  %791 = vmatpush.msrb.mxu1 %v683_v63  ;;  %v463_v62 = vperm.slane %v453_v55, 6 }
 0x158   :  { %652 = vmatpush.msra.mxu2 %v301_v0  ;;  %672 = vmatpush.msra.mxu3 %v302_v1  ;;  %v457_v1 = vperm.slane %v453_v55, 0 }
 0x159   :  { %772 = vmatpush.msrb.mxu0 %v677_v4  ;;  %792 = vmatpush.msrb.mxu1 %v678_v5 }
 0x15a   :  { %653 = vmatmul.f32.vlgmr.msra.gmra.mxu2 %v2117_v3  ;;  %673 = vmatmul.f32.vlgmr.msra.gmra.mxu3 %v2117_v3 }
 0x15b   :  { %773 = vmatmul.f32.vlgmr.msrb.gmra.mxu0 %v2117_v3  ;;  %793 = vmatmul.f32.vlgmr.msrb.gmra.mxu1 %v2117_v3 }
 0x15c   :  { %797 = vmatpush.msrb.mxu2 %v754_v6  ;;  %817 = vmatpush.msrb.mxu3 %v755_v7 }
 0x15d   :  { %837 = vmatpush.msra.mxu0 %v756_v8 }
 0x15e   :  { %798 = vmatpush.msrb.mxu2 %v749_v9  ;;  %818 = vmatpush.msrb.mxu3 %v750_v49  ;;  %v458_v9 = vperm.slane %v453_v55, 1 }
 0x15f   :  { %838 = vmatpush.msra.mxu0 %v751_v10 }
 0x160   :  { %799 = vmatpush.msrb.mxu2 %v744_v11  ;;  %819 = vmatpush.msrb.mxu3 %v745_v12  ;;  %v454_v11 = vld [vmem:[#allocation5 + $0x8] sm:$0x3] }
 0x161   :  { %839 = vmatpush.msra.mxu0 %v746_v13 }
 0x162   :  { %800 = vmatpush.msrb.mxu2 %v739_v14  ;;  %820 = vmatpush.msrb.mxu3 %v740_v15  ;;  %v465_v14 = vperm.slane %v454_v11, 0  ;;  %v466_v15 = vperm.slane %v454_v11, 1 }
 0x163   :  { %840 = vmatpush.msra.mxu0 %v741_v16  ;;  %v460_v16 = vperm.slane %v453_v55, 3 }
 0x164   :  { %801 = vmatpush.msrb.mxu2 %v734_v17  ;;  %821 = vmatpush.msrb.mxu3 %v735_v2  ;;  %v461_v17 = vperm.slane %v453_v55, 4 }
 0x165   :  { %841 = vmatpush.msra.mxu0 %v736_v18 }
 0x166   :  { %802 = vmatpush.msrb.mxu2 %v729_v19  ;;  %822 = vmatpush.msrb.mxu3 %v730_v20 }
 0x167   :  { %842 = vmatpush.msra.mxu0 %v731_v21 }
 0x168   :  { %803 = vmatpush.msrb.mxu2 %v724_v22  ;;  %823 = vmatpush.msrb.mxu3 %v725_v23 }
 0x169   :  { %843 = vmatpush.msra.mxu0 %v726_v24 }
 0x16a   :  { %804 = vmatpush.msrb.mxu2 %v719_v25  ;;  %824 = vmatpush.msrb.mxu3 %v720_v26 }
 0x16b   :  { %844 = vmatpush.msra.mxu0 %v721_v27 }
 0x16c   :  { %805 = vmatpush.msrb.mxu2 %v714_v28  ;;  %825 = vmatpush.msrb.mxu3 %v715_v29 }
 0x16d   :  { %845 = vmatpush.msra.mxu0 %v716_v30 }
 0x16e   :  { %806 = vmatpush.msrb.mxu2 %v709_v31  ;;  %826 = vmatpush.msrb.mxu3 %v710_v32 }
 0x16f   :  { %846 = vmatpush.msra.mxu0 %v711_v33 }
 0x170   :  { %807 = vmatpush.msrb.mxu2 %v704_v34  ;;  %827 = vmatpush.msrb.mxu3 %v705_v35 }
 0x171   :  { %847 = vmatpush.msra.mxu0 %v706_v36 }
 0x172   :  { %808 = vmatpush.msrb.mxu2 %v699_v37  ;;  %828 = vmatpush.msrb.mxu3 %v700_v38 }
 0x173   :  { %848 = vmatpush.msra.mxu0 %v701_v39 }
 0x174   :  { %809 = vmatpush.msrb.mxu2 %v694_v40  ;;  %829 = vmatpush.msrb.mxu3 %v695_v41 }
 0x175   :  { %849 = vmatpush.msra.mxu0 %v696_v42 }
 0x176   :  { %810 = vmatpush.msrb.mxu2 %v689_v43  ;;  %830 = vmatpush.msrb.mxu3 %v690_v44 }
 0x177   :  { %850 = vmatpush.msra.mxu0 %v691_v45 }
 0x178   :  { %811 = vmatpush.msrb.mxu2 %v684_v46  ;;  %831 = vmatpush.msrb.mxu3 %v685_v47 }
 0x179   :  { %851 = vmatpush.msra.mxu0 %v686_v48 }
 0x17a   :  { %812 = vmatpush.msrb.mxu2 %v679_v50  ;;  %832 = vmatpush.msrb.mxu3 %v680_v51 }
 0x17b   :  { %852 = vmatpush.msra.mxu0 %v681_v52  ;;  %813 = vmatmul.f32.vlgmr.msrb.gmra.mxu2 %v2117_v3 }
 0x17c   :  { %833 = vmatmul.f32.vlgmr.msrb.gmra.mxu3 %v2117_v3  ;;  %853 = vmatmul.f32.vlgmr.msra.gmra.mxu0 %v2117_v3 }
 0x1b4   :  { %v554_v53 = vpop.f32.mrf.mxu1  ;;  %v534_v56 = vpop.f32.mrf.mxu0 }
 0x1b5   :  { %v535_v63 = vadd.f32 %v534_v56, %v459_v58  ;;  %v555_v21 = vadd.f32 %v554_v53, %v460_v16 }
 0x1b9   :  { %v514_v54 = vpop.f32.mrf.mxu3  ;;  %v494_v5 = vpop.f32.mrf.mxu2 }
 0x1ba   :  { %v495_v8 = vadd.f32 %v494_v5, %v457_v1  ;;  %v515_v49 = vadd.f32 %v514_v54, %v458_v9 }
 0x1be   :  { %v634_v59 = vpop.f32.mrf.mxu1  ;;  %v614_v0 = vpop.f32.mrf.mxu0 }
 0x1bf   :  { %v635_v60 = vadd.f32 %v634_v59, %v464_v57  ;;  %v615_v7 = vadd.f32 %v614_v0, %v463_v62 }
 0x1c1   :  { %1015 = vmatpush.xpose.msra.mxu2 %v635_v60 }
 0x1c3   :  { %v594_v4 = vpop.f32.mrf.mxu3  ;;  %v574_v10 = vpop.f32.mrf.mxu2 }
 0x1c4   :  { %v595_v6 = vadd.f32 %v594_v4, %v462_v61  ;;  %1016 = vmatmul.f32.vlgmr.msra.gmra.mxu2 %v535_v63  ;;  %v575_v22 = vadd.f32 %v574_v10, %v461_v17 }
 0x1c6   :  { %872 = vmatpush.xpose.msra.mxu1 %v595_v6 }
 0x1c9   :  { %873 = vmatmul.f32.vlgmr.msra.gmra.mxu1 %v495_v8 }
 0x1ca   :  { %917 = vmatpush.xpose.msrb.mxu1 %v615_v7 }
 0x1d1   :  { %918 = vmatmul.f32.vlgmr.msrb.gmra.mxu1 %v515_v49 }
 0x1d8   :  { %v774_v12 = vpop.f32.mrf.mxu0  ;;  %v794_v13 = vpop.f32.mrf.mxu1 }
 0x1d9   :  { %1290 = vmatpush.msk.msra.mxu1 %vm950_vm7, %v794_v13 }
 0x1db   :  { %1292 = vmatpush.msk.msrb.mxu1 %vm950_vm7, %v774_v12 }
 0x1dd   :  { %v654_v2 = vpop.f32.mrf.mxu2  ;;  %v674_v18 = vpop.f32.mrf.mxu3 }
 0x1de   :  { %v655_v19 = vadd.f32 %v654_v2, %v465_v14  ;;  %v675_v20 = vadd.f32 %v674_v18, %v466_v15 }
 0x1e0   :  { %1086 = vmatpush.xpose.msrb.mxu0 %v655_v19  ;;  %1157 = vmatpush.xpose.msrb.mxu2 %v675_v20 }
 0x1e3   :  { %1087 = vmatmul.f32.vlgmr.msrb.gmra.mxu0 %v555_v21  ;;  %1158 = vmatmul.f32.vlgmr.msrb.gmra.mxu2 %v575_v22 }
 0x1f9   :  { %v854_v24 = vpop.f32.mrf.mxu0 }
 0x1fe   :  { %v814_v23 = vpop.f32.mrf.mxu2 }
 0x1ff   :  { %1294 = vmatpush.msk.msra.mxu3 %vm950_vm7, %v814_v23 }
 0x201   :  { %1298 = vmatpush.msk.msrb.mxu3 %vm950_vm7, %v854_v24 }
 0x246   :  { %v874_v25 = vpop.f32.mrf.mxu1 }
 0x247   :  { %v1017_v26 = vpop.f32.mrf.mxu2  ;;  %v878_v27 = vsel %vm877_vm8, %v874_v25, -inf }
 0x248   :  { %v1020_v28 = vsel %vm877_vm8, %v1017_v26, -inf  ;;  %879 = vmax.xlane.f32.xlu0 %v878_v27 }
 0x249   :  { %1021 = vmax.xlane.f32.xlu2 %v1020_v28 }
 0x24e   :  { %v919_v29 = vpop.f32.mrf.mxu1 }
 0x24f   :  { %v922_v30 = vsel %vm877_vm8, %v919_v29, -inf }
 0x250   :  { %923 = vmax.xlane.f32.xlu1 %v922_v30  ;;  %v834_v30 = vpop.f32.mrf.mxu3 }
 0x260   :  { %v1088_v31 = vpop.f32.mrf.mxu0 }
 0x261   :  { %v1091_v32 = vsel %vm877_vm8, %v1088_v31, -inf }
 0x262   :  { %1092 = vmax.xlane.f32.xlu2 %v1091_v32 }
 0x266   :  { %v1159_v33 = vpop.f32.mrf.mxu2 }
 0x267   :  { %v1162_v34 = vsel %vm877_vm8, %v1159_v33, -inf }
 0x268   :  { %1163 = vmax.xlane.f32.xlu1 %v1162_v34 }
 0x2bb   :  { %v880_v35 = vpop.xlane.xlu0 %879 }
 0x2bc   :  { %v1022_v36 = vpop.xlane.xlu2 %1021  ;;  %v881_v37 = vsub.f32 %v874_v25, %v880_v35 }
 0x2bd   :  { %v1023_v38 = vsub.f32 %v1017_v26, %v1022_v36 }
 0x2be   :  { %v882_v39 = vmul.f32 1.442695, %v881_v37 }
 0x2bf   :  { %v1024_v40 = vmul.f32 1.442695, %v1023_v38 }
 0x2c0   :  { %1312 = vpow2.f32 %v882_v39 }
 0x2c1   :  { %1314 = vpow2.f32 %v1024_v40 }
 0x2c3   :  { %v924_v41 = vpop.xlane.xlu1 %923 }
 0x2c4   :  { %v925_v42 = vsub.f32 %v919_v29, %v924_v41 }
 0x2c6   :  { %v2239_v43 = vpop.eup %1312  ;;  %v926_v44 = vmul.f32 1.442695, %v925_v42 }
 0x2c7   :  { %v1315_v45 = vpop.eup %1314  ;;  %v884_v46 = vsel %vm877_vm8, %v2239_v43, 0.0 }
 0x2c8   :  { %1316 = vpow2.f32 %v926_v44  ;;  %v1026_v47 = vsel %vm877_vm8, %v1315_v45, 0.0  ;;  %885 = vadd.xlane.f32.xlu2 %v884_v46 }
 0x2c9   :  { %1027 = vadd.xlane.f32.xlu1 %v1026_v47 }
 0x2ce   :  { %v2244_v48 = vpop.eup %1316 }
 0x2cf   :  { %v928_v50 = vsel %vm877_vm8, %v2244_v48, 0.0 }
 0x2d0   :  { %929 = vadd.xlane.f32.xlu0 %v928_v50 }
 0x2d5   :  { %v1093_v51 = vpop.xlane.xlu2 %1092 }
 0x2d6   :  { %v1094_v52 = vsub.f32 %v1088_v31, %v1093_v51 }
 0x2d8   :  { %v1095_v53 = vmul.f32 1.442695, %v1094_v52 }
 0x2da   :  { %1318 = vpow2.f32 %v1095_v53 }
 0x2db   :  { %v1164_v56 = vpop.xlane.xlu1 %1163 }
 0x2dc   :  { %v1165_v54 = vsub.f32 %v1159_v33, %v1164_v56 }
 0x2de   :  { %v1166_v55 = vmul.f32 1.442695, %v1165_v54 }
 0x2e0   :  { %v2248_v57 = vpop.eup %1318  ;;  %1320 = vpow2.f32 %v1166_v55 }
 0x2e1   :  { %v1097_v58 = vsel %vm877_vm8, %v2248_v57, 0.0 }
 0x2e2   :  { %1098 = vadd.xlane.f32.xlu1 %v1097_v58 }
 0x2e6   :  { %v2252_v59 = vpop.eup %1320 }
 0x2e7   :  { %v1168_v60 = vsel %vm877_vm8, %v2252_v59, 0.0 }
 0x2e8   :  { %1169 = vadd.xlane.f32.xlu0 %v1168_v60 }
 0x33b   :  { %v886_v61 = vpop.xlane.xlu2 %885 }
 0x33c   :  { %v1028_v62 = vpop.xlane.xlu1 %1027  ;;  %v898_v25 = vand.u32 2147483648, %v886_v61  ;;  %vm892_vm3 = vweird.f32 %v886_v61  ;;  %v896_v27 = vand.u32 2147483647, %v886_v61 }
 0x33d   :  { %1322 = vrcp.f32 %v1028_v62  ;;  %v1040_v6 = vand.u32 2147483648, %v1028_v62  ;;  %v1038_v9 = vand.u32 2147483647, %v1028_v62  ;;  %vm1034_vm10 = vweird.f32 %v1028_v62 }
 0x33e   :  { %1324 = vrcp.f32 %v886_v61  ;;  %v899_v32 = vor.u32 1.1754944e-38, %v898_v25  ;;  %vm897_vm5 = vcmp.eq.f32.partialorder %v896_v27, 8.507059e+37 }
 0x33f   :  { %v1041_v11 = vor.u32 1.1754944e-38, %v1040_v6  ;;  %vm1039_vm12 = vcmp.eq.f32.partialorder %v1038_v9, 8.507059e+37 }
 0x343   :  { %v1323_v63 = vpop.eup %1322  ;;  %v930_v0 = vpop.xlane.xlu0 %929 }
 0x344   :  { %v1325_v1 = vpop.eup %1324  ;;  %v1030_v4 = vmul.f32 %v1323_v63, %v1028_v62  ;;  %1326 = vrcp.f32 %v930_v0  ;;  %vm1035_vm9 = vweird.f32 %v1323_v63  ;;  %v942_v17 = vand.u32 2147483648, %v930_v0 }
 0x345   :  { %v888_v7 = vmul.f32 %v1325_v1, %v886_v61  ;;  %vm1036_vm11 = vmor %vm1034_vm10, %vm1035_vm9  ;;  %v940_v20 = vand.u32 2147483647, %v930_v0  ;;  %vm936_vm15 = vweird.f32 %v930_v0  ;;  %vm893_vm1 = vweird.f32 %v1325_v1 }
 0x346   :  { %v1031_v5 = vsub.f32 1.0, %v1030_v4  ;;  %v943_v22 = vor.u32 1.1754944e-38, %v942_v17  ;;  %vm894_vm4 = vmor %vm892_vm3, %vm893_vm1 }
 0x347   :  { %v889_v12 = vsub.f32 1.0, %v888_v7  ;;  %vm941_vm2 = vcmp.eq.f32.partialorder %v940_v20, 8.507059e+37 }
 0x348   :  { %v1032_v8 = vmul.f32 %v1323_v63, %v1031_v5  ;;  %v1309_v5 = vld [vmem:[%s2290_s6] ss:$0 sm:$0xff] }
 0x349   :  { %v890_v18 = vmul.f32 %v1325_v1, %v889_v12 }
 0x34a   :  { %v1327_v49 = vpop.eup %1326  ;;  %v1033_v10 = vadd.f32 %v1323_v63, %v1032_v8 }
 0x34b   :  { %v932_v13 = vmul.f32 %v1327_v49, %v930_v0  ;;  %vm937_vm14 = vweird.f32 %v1327_v49  ;;  %v891_v23 = vadd.f32 %v1325_v1, %v890_v18 }
 0x34c   :  { %v1037_v14 = vsel %vm1036_vm11, %v1323_v63, %v1033_v10  ;;  %vm938_vm0 = vmor %vm936_vm15, %vm937_vm14 }
 0x34d   :  { %v1042_v15 = vsel %vm1039_vm12, %v1041_v11, %v1037_v14  ;;  %v933_v16 = vsub.f32 1.0, %v932_v13  ;;  %v895_v31 = vsel %vm894_vm4, %v1325_v1, %v891_v23  ;;  %v1310_v23 = vld [vmem:[%s2291_s7] ss:$0 sm:$0xff] }
 0x34e   :  { %v1043_v2 = vmul.f32 %v1315_v45, %v1042_v15  ;;  %v900_v33 = vsel %vm897_vm5, %v899_v32, %v895_v31 }
 0x34f   :  { %v934_v19 = vmul.f32 %v1327_v49, %v933_v16  ;;  %v901_v37 = vmul.f32 %v2239_v43, %v900_v33 }
 0x350   :  { %1295 = vmatmul.msk.f32.vlgmr.msra.gmra.mxu3 %vm946_vm13, %v1043_v2 }
 0x351   :  { %v935_v21 = vadd.f32 %v1327_v49, %v934_v19 }
 0x353   :  { %v939_v24 = vsel %vm938_vm0, %v1327_v49, %v935_v21 }
 0x354   :  { %v944_v26 = vsel %vm941_vm2, %v943_v22, %v939_v24 }
 0x355   :  { %v1099_v28 = vpop.xlane.xlu1 %1098  ;;  %v945_v29 = vmul.f32 %v2244_v48, %v944_v26  ;;  %v1311_v26 = vld [vmem:[%s2292_s8] ss:$0 sm:$0xff] }
 0x356   :  { %1328 = vrcp.f32 %v1099_v28  ;;  %v1111_v39 = vand.u32 2147483648, %v1099_v28  ;;  %v1109_v41 = vand.u32 2147483647, %v1099_v28  ;;  %vm1105_vm8 = vweird.f32 %v1099_v28 }
 0x357   :  { %1291 = vmatmul.msk.f32.vlgmr.msra.gmra.mxu1 %vm946_vm13, %v945_v29 }
 0x358   :  { %1296 = vmatpush.msk.msra.mxu1 %vm950_vm7, %v834_v30  ;;  %v1112_v46 = vor.u32 1.1754944e-38, %v1111_v39  ;;  %vm1110_vm10 = vcmp.eq.f32.partialorder %v1109_v41, 8.507059e+37 }
 0x35b   :  { %v1170_v34 = vpop.xlane.xlu0 %1169 }
 0x35c   :  { %v1329_v35 = vpop.eup %1328  ;;  %1330 = vrcp.f32 %v1170_v34  ;;  %v1182_v51 = vand.u32 2147483648, %v1170_v34  ;;  %v1180_v53 = vand.u32 2147483647, %v1170_v34  ;;  %vm1176_vm12 = vweird.f32 %v1170_v34 }
 0x35d   :  { %v1101_v36 = vmul.f32 %v1329_v35, %v1099_v28  ;;  %vm1106_vm6 = vweird.f32 %v1329_v35 }
 0x35e   :  { %vm1107_vm9 = vmor %vm1105_vm8, %vm1106_vm6  ;;  %v1183_v54 = vor.u32 1.1754944e-38, %v1182_v51  ;;  %vm1181_vm15 = vcmp.eq.f32.partialorder %v1180_v53, 8.507059e+37 }
 0x35f   :  { %v1102_v38 = vsub.f32 1.0, %v1101_v36  ;;  %1293 = vmatmul.msk.f32.vlgmr.msrb.gmra.mxu1 %vm946_vm13, %v901_v37 }
 0x361   :  { %v1103_v40 = vmul.f32 %v1329_v35, %v1102_v38 }
 0x362   :  { %v1331_v42 = vpop.eup %1330 }
 0x363   :  { %v1104_v44 = vadd.f32 %v1329_v35, %v1103_v40  ;;  %v1172_v45 = vmul.f32 %v1331_v42, %v1170_v34  ;;  %vm1177_vm11 = vweird.f32 %v1331_v42 }
 0x364   :  { %vm1178_vm14 = vmor %vm1176_vm12, %vm1177_vm11 }
 0x365   :  { %v1108_v47 = vsel %vm1107_vm9, %v1329_v35, %v1104_v44  ;;  %v1173_v48 = vsub.f32 1.0, %v1172_v45 }
 0x366   :  { %v1113_v50 = vsel %vm1110_vm10, %v1112_v46, %v1108_v47 }
 0x367   :  { %v1114_v43 = vmul.f32 %v2248_v57, %v1113_v50  ;;  %v1174_v52 = vmul.f32 %v1331_v42, %v1173_v48 }
 0x369   :  { %v1175_v56 = vadd.f32 %v1331_v42, %v1174_v52  ;;  %1297 = vmatmul.msk.f32.vlgmr.msra.gmra.mxu1 %vm946_vm13, %v1114_v43 }
 0x36b   :  { %v1179_v55 = vsel %vm1178_vm14, %v1331_v42, %v1175_v56 }
 0x36c   :  { %v1184_v58 = vsel %vm1181_vm15, %v1183_v54, %v1179_v55 }
 0x36d   :  { %v1185_v60 = vmul.f32 %v2252_v59, %v1184_v58 }
 0x36f   :  { %1299 = vmatmul.msk.f32.vlgmr.msrb.gmra.mxu3 %vm946_vm13, %v1185_v60 }
 0x3d3   :  { %v1067_v63 = vpop.f32.mrf.mxu3 }
 0x3d4   :  { %v971_v61 = vpop.f32.mrf.mxu1 }
 0x3dc   :  { %v997_v62 = vpop.f32.mrf.mxu1 }
 0x3dd   :  { %v998_v57 = vadd.f32 %v997_v62, %v971_v61 }
 0x3df   :  { %v1070_v1 = vadd.f32 %v1067_v63, %v998_v57 }
 0x3e6   :  { %v1138_v0 = vpop.f32.mrf.mxu1 }
 0x3e7   :  { %v1141_v4 = vadd.f32 %v1138_v0, %v1070_v1 }
 0x3f2   :  { %v1209_v6 = vpop.f32.mrf.mxu3 }
 0x3f3   :  { %v1212_v7 = vadd.f32 %v1209_v6, %v1141_v4 }
 0x3f5   :  { %v1217_v8 = vadd.f32 %v1309_v5, %v1212_v7 }
 0x3f7   :  { %v1218_v9 = vadd.f32 %v1217_v8, %v2117_v3 }
 0x3f9   :  { %v1219_v59 = vsel %vm950_vm7, %v1218_v9, 0.0  ;;  %v1223_v49 = vmul.f32 %v1218_v9, %v1218_v9 }
 0x3fa   :  { %1220 = vadd.xlane.f32.xlu2 %v1219_v59 }
 0x3fb   :  { %v1224_v10 = vsel %vm950_vm7, %v1223_v49, 0.0 }
 0x3fc   :  { %1225 = vadd.xlane.f32.xlu0 %v1224_v10 }
 0x46d   :  { %v1221_v11 = vpop.xlane.xlu2 %1220 }
 0x46e   :  { %v1222_v12 = vmul.f32 0.028571429, %v1221_v11 }
 0x46f   :  { %v1226_v13 = vpop.xlane.xlu0 %1225 }
 0x470   :  { %v1228_v3 = vmul.f32 %v1222_v12, %v1222_v12  ;;  %v1227_v14 = vmul.f32 0.028571429, %v1226_v13  ;;  %v1230_v22 = vsub.f32 %v1218_v9, %v1222_v12 }
 0x472   :  { %v1229_v15 = vsub.f32 %v1227_v14, %v1228_v3 }
 0x474   :  { %v1231_v16 = vadd.f32 1e-05, %v1229_v15 }
 0x476   :  { %1332 = vrsqrt.f32 %v1231_v16  ;;  %vm1238_vm13 = vweird.f32 %v1231_v16 }
 0x47c   :  { %v1333_v17 = vpop.eup %1332 }
 0x47d   :  { %v1233_v2 = vmul.f32 %v1333_v17, %v1231_v16  ;;  %vm1239_vm7 = vweird.f32 %v1333_v17 }
 0x47e   :  { %vm1240_vm0 = vmor %vm1238_vm13, %vm1239_vm7 }
 0x47f   :  { %v1234_v18 = vmul.f32 %v1333_v17, %v1233_v2 }
 0x481   :  { %v1235_v19 = vmul.f32 0.5, %v1234_v18 }
 0x483   :  { %v1236_v20 = vsub.f32 1.5, %v1235_v19 }
 0x485   :  { %v1237_v21 = vmul.f32 %v1333_v17, %v1236_v20 }
 0x487   :  { %v1241_v24 = vsel %vm1240_vm0, %v1333_v17, %v1237_v21 }
 0x488   :  { %v1242_v25 = vmul.f32 %v1241_v24, %v1230_v22 }
 0x48a   :  { %v1247_v27 = vmul.f32 %v1310_v23, %v1242_v25 }
 0x48c   :  { %v1252_v28 = vadd.f32 %v1311_v26, %v1247_v27 }
 0x48e   :  { %1253 = vst [vmem:[#allocation8] sm:$0xf] %v1252_v28 }
 0x48f   :  { %1264 = dma.vmem_to_hbm [thread:$0]  %s1260_s19, 64, %s1262_s22, [#allocation4]  }
 0x490   :  { %1458 = dma.done.wait [#allocation4], 64  }
 0x491   :  { %1459 = vsyncadd [#allocation4], 4294967232 }
 0x492   :  { %1460 = dma.done.wait [#allocation10], 64  }
 0x493   :  { %1461 = vsyncadd [#allocation10], 4294967232 }
 0x494   :  { %1284 = vsyncpa [#allocation3], 1 }
 0x495   :  { %1285 = vsyncpa [#allocation6], 1 }
 0x496   :  { %1286 = vsyncpa [#allocation4], 1 }
 0x497   :  { %1287 = vsyncpa [#allocation10], 1 }

</bundles_post_ra>
